<compile_context>
chip_gen: v5e
topology: v5e:2x2
jax: 0.10.0
libtpu: 0.0.40
codegen_flags: <defaults>
</compile_context>

<pallas_src>
import functools

import jax
import jax.numpy as jnp
from jax.experimental import pallas as pl
from jax.experimental.pallas import tpu as pltpu


# ---------------------------------------------------------------------------
# Fused tiled matmul kernel: out = maybe_relu((x @ w) * scale + bias)
# ---------------------------------------------------------------------------

def _round_up(x, m):
    return ((x + m - 1) // m) * m


def _pick_tile(dim, max_tile, align):
    """Smallest aligned tile that covers `dim` in one step, or — if that exceeds
    `max_tile` — a balanced aligned tile so no grid step is pure padding."""
    padded = _round_up(dim, align)
    if padded <= max_tile:
        return padded
    steps = -(-padded // max_tile)
    return _round_up(-(-padded // steps), align)


def _pad_to(a, shape, dtype):
    a = a.astype(dtype)
    if tuple(a.shape) == tuple(shape):
        return a
    pads = [(0, t - s) for s, t in zip(a.shape, shape)]
    return jnp.pad(a, pads)


def _matmul_kernel(x_ref, w_ref, s_ref, b_ref, o_ref, acc_ref, *, relu):
    @pl.when(pl.program_id(2) == 0)
    def _():
        acc_ref[...] = jnp.zeros_like(acc_ref)

    acc_ref[...] += jnp.dot(x_ref[...], w_ref[...],
                            preferred_element_type=jnp.float32)

    @pl.when(pl.program_id(2) == pl.num_programs(2) - 1)
    def _():
        acc = acc_ref[...] * s_ref[...] + b_ref[...]
        if relu:
            acc = jnp.maximum(acc, 0.0)
        o_ref[...] = acc.astype(o_ref.dtype)


def pallas_matmul(x, w, scale=None, bias=None, relu=False,
                  out_dtype=jnp.float32, tm_max=512, tn_max=256, tk_max=1024):
    """Tiled, pipelined (M,K)@(K,N) in bf16 on the MXU with f32 accumulation and a
    fused scale/bias/ReLU epilogue.  N is padded to a lane-dense multiple of 128;
    tile sizes adapt to the problem so no grid step is all-padding."""
    M, K = x.shape
    K2, N = w.shape
    assert K == K2, (K, K2)

    tm = _pick_tile(M, tm_max, 8)
    tk = _pick_tile(K, tk_max, 128)
    tn = _pick_tile(N, tn_max, 128)
    Mp, Kp, Np = _round_up(M, tm), _round_up(K, tk), _round_up(N, tn)

    xp = _pad_to(x, (Mp, Kp), jnp.bfloat16)
    wp = _pad_to(w, (Kp, Np), jnp.bfloat16)
    if scale is None:
        scale = jnp.ones((N,), jnp.float32)
    if bias is None:
        bias = jnp.zeros((N,), jnp.float32)
    sp = _pad_to(jnp.asarray(scale, jnp.float32).reshape(1, N), (1, Np), jnp.float32)
    bp = _pad_to(jnp.asarray(bias, jnp.float32).reshape(1, N), (1, Np), jnp.float32)

    grid = (Mp // tm, Np // tn, Kp // tk)
    out = pl.pallas_call(
        functools.partial(_matmul_kernel, relu=relu),
        out_shape=jax.ShapeDtypeStruct((Mp, Np), out_dtype),
        grid_spec=pltpu.PrefetchScalarGridSpec(
            num_scalar_prefetch=0,
            grid=grid,
            in_specs=[
                pl.BlockSpec((tm, tk), lambda i, j, k: (i, k)),
                pl.BlockSpec((tk, tn), lambda i, j, k: (k, j)),
                pl.BlockSpec((1, tn), lambda i, j, k: (0, j)),
                pl.BlockSpec((1, tn), lambda i, j, k: (0, j)),
            ],
            out_specs=pl.BlockSpec((tm, tn), lambda i, j, k: (i, j)),
            scratch_shapes=[pltpu.VMEM((tm, tn), jnp.float32)],
        ),
        compiler_params=pltpu.CompilerParams(
            dimension_semantics=("parallel", "parallel", "arbitrary")),
    )(xp, wp, sp, bp)
    return out[:M, :N]


# ---------------------------------------------------------------------------
# Convolution (NHWC) via im2col + fused matmul; 1x1 convs skip im2col.
# ---------------------------------------------------------------------------

def _im2col_nhwc(x, kh, kw, stride, pad):
    """x: (N,H,W,C) NHWC -> patches (N*OH*OW, KH*KW*C), plus OH, OW."""
    N, H, W, C = x.shape
    xp = jnp.pad(x, ((0, 0), (pad, pad), (pad, pad), (0, 0)))
    Hp, Wp = H + 2 * pad, W + 2 * pad
    OH = (Hp - kh) // stride + 1
    OW = (Wp - kw) // stride + 1
    cols = []
    for i in range(kh):
        for j in range(kw):
            cols.append(xp[:, i:i + stride * (OH - 1) + 1:stride,
                           j:j + stride * (OW - 1) + 1:stride, :])
    pat = jnp.stack(cols, axis=3)                 # (N, OH, OW, KK, C)
    return pat.reshape(N * OH * OW, kh * kw * C), OH, OW


def conv2d(x, weight, scale, bias, stride, pad, relu, out_dtype=jnp.bfloat16):
    """Conv on NHWC activations with fused folded-BN scale/bias and optional ReLU.
    weight stays in the PyTorch (OC, Cin, KH, KW) layout."""
    N, H, W, C = x.shape
    OC, Cin, KH, KW = weight.shape
    assert Cin == C
    if KH == 1 and KW == 1:
        # 1x1 conv: no im2col, matmul directly on (N*OH*OW, C).
        xp = jnp.pad(x, ((0, 0), (pad, pad), (pad, pad), (0, 0))) if pad else x
        xp = xp[:, ::stride, ::stride, :]
        OH, OW = xp.shape[1], xp.shape[2]
        patches = xp.reshape(N * OH * OW, C)
        w_mat = weight.reshape(OC, C).T                      # (C, OC)
    else:
        patches, OH, OW = _im2col_nhwc(x, KH, KW, stride, pad)
        w_mat = weight.transpose(2, 3, 1, 0).reshape(KH * KW * C, OC)
    out = pallas_matmul(patches, w_mat, scale, bias, relu=relu, out_dtype=out_dtype)
    return out.reshape(N, OH, OW, OC)


# ---------------------------------------------------------------------------
# MaxPool 3x3 / stride 2 / pad 1 — one grid step per image, 9-way VPU max.
# ---------------------------------------------------------------------------

def _maxpool_kernel(*refs):
    *tap_refs, o_ref = refs
    res = tap_refs[0][...]
    for r_ref in tap_refs[1:]:
        res = jnp.maximum(res, r_ref[...])
    o_ref[...] = res


def maxpool2d(x, k=3, stride=2, pad=1):
    """x: NHWC.  The 9 (row, col) window taps are built outside as cheap XLA strided
    views of the padded input (~ (k*k)/(s*s) = 2.25x data for stride 2); the kernel
    reduces full (OH, OW, C) blocks with 8 lane-dense VPU maxima per image."""
    N, H, W, C = x.shape
    OH = (H + 2 * pad - k) // stride + 1
    OW = (W + 2 * pad - k) // stride + 1
    xp = jnp.pad(x, ((0, 0), (pad, pad), (pad, pad), (0, 0)),
                 constant_values=-jnp.inf)
    taps = [xp[:, r:r + stride * (OH - 1) + 1:stride,
               t:t + stride * (OW - 1) + 1:stride, :]
            for r in range(k) for t in range(k)]            # each (N, OH, OW, C)

    blk = pl.BlockSpec((1, OH, OW, C), lambda n: (n, 0, 0, 0))
    return pl.pallas_call(
        _maxpool_kernel,
        out_shape=jax.ShapeDtypeStruct((N, OH, OW, C), x.dtype),
        grid=(N,),
        in_specs=[blk] * (k * k),
        out_specs=blk,
        compiler_params=pltpu.CompilerParams(dimension_semantics=("parallel",)),
    )(*taps)


# ---------------------------------------------------------------------------
# Bilinear upsample (align_corners=False) fused into one kernel: Ah @ X @ Aw^T
# ---------------------------------------------------------------------------

def _bilinear_matrix(in_size, out_size):
    """PyTorch F.interpolate(mode='bilinear', align_corners=False) weights."""
    i = jnp.arange(out_size, dtype=jnp.float32)
    src = (i + 0.5) * (in_size / out_size) - 0.5
    src = jnp.clip(src, 0.0, float(in_size - 1))
    i0 = jnp.floor(src).astype(jnp.int32)
    i1 = jnp.minimum(i0 + 1, in_size - 1)
    w1 = src - i0.astype(jnp.float32)
    w0 = 1.0 - w1
    m = jnp.zeros((out_size, in_size), jnp.float32)
    m = m.at[jnp.arange(out_size), i0].add(w0)
    m = m.at[jnp.arange(out_size), i1].add(w1)
    return m


def _bilinear_kernel(x_ref, ah_ref, awt_ref, o_ref):
    t = jnp.dot(ah_ref[...], x_ref[0].astype(jnp.float32),
                preferred_element_type=jnp.float32)
    o_ref[0] = jnp.dot(t, awt_ref[...],
                       preferred_element_type=jnp.float32).astype(o_ref.dtype)


def bilinear_upsample_nchw(x, out_h, out_w):
    """x: (N, C, H, W) -> (N, C, out_h, out_w). Both resizes fused in one kernel,
    no HBM intermediate, out_w on the lane axis."""
    N, C, H, W = x.shape
    Ah = _bilinear_matrix(H, out_h)                  # (out_h, H)
    AwT = _bilinear_matrix(W, out_w).T               # (W, out_w)
    xb = x.reshape(N * C, H, W)
    out = pl.pallas_call(
        _bilinear_kernel,
        out_shape=jax.ShapeDtypeStruct((N * C, out_h, out_w), jnp.float32),
        grid=(N * C,),
        in_specs=[
            pl.BlockSpec((1, H, W), lambda b: (b, 0, 0)),
            pl.BlockSpec((out_h, H), lambda b: (0, 0)),
            pl.BlockSpec((W, out_w), lambda b: (0, 0)),
        ],
        out_specs=pl.BlockSpec((1, out_h, out_w), lambda b: (b, 0, 0)),
        compiler_params=pltpu.CompilerParams(dimension_semantics=("parallel",)),
    )(xb, Ah, AwT)
    return out.reshape(N, C, out_h, out_w)


# ---------------------------------------------------------------------------
# Parameter construction (deterministic, random init — no checkpoint load)
# ---------------------------------------------------------------------------

def _fold_bn(gamma, beta, mean, var, conv_bias=None, eps=1e-5):
    scale = gamma / jnp.sqrt(var + eps)
    if conv_bias is None:
        bias = beta - mean * scale
    else:
        bias = (conv_bias - mean) * scale + beta
    return scale, bias


def init_params(key, in_channels, num_classes):
    # scaled-down channel plan (see TODO(synk) at top)
    C1, C2, C3 = 16, 32, 64        # conv1 out / body stand-ins
    HEAD = 32                      # FCNHead intermediate channels
    ks = list(jax.random.split(key, 16))

    def conv_w(k, oc, ic, kh, kw):
        fan_in = ic * kh * kw
        return jax.random.normal(k, (oc, ic, kh, kw), jnp.float32) * (fan_in ** -0.5)

    def bn(k, c):
        k1, k2, k3, k4 = jax.random.split(k, 4)
        gamma = 1.0 + 0.1 * jax.random.normal(k1, (c,), jnp.float32)
        beta = 0.1 * jax.random.normal(k2, (c,), jnp.float32)
        mean = 0.1 * jax.random.normal(k3, (c,), jnp.float32)
        var = 1.0 + 0.1 * jax.random.uniform(k4, (c,), jnp.float32)
        return gamma, beta, mean, var

    p = {}
    # replaced backbone.conv1: Conv2d(in_channels, C1, k=7, stride=2, padding=2, bias=True)
    p["conv1_w"] = conv_w(ks[0], C1, in_channels, 7, 7)
    p["conv1_b"] = 0.01 * jax.random.normal(ks[1], (C1,), jnp.float32)
    p["conv1_bn"] = bn(ks[2], C1)
    # backbone body stand-ins (conv 3x3, stride 1, pad 1, no bias, BN, ReLU)
    p["body1_w"] = conv_w(ks[3], C2, C1, 3, 3)
    p["body1_bn"] = bn(ks[4], C2)
    p["body2_w"] = conv_w(ks[5], C3, C2, 3, 3)
    p["body2_bn"] = bn(ks[6], C3)
    # FCN head: Conv2d(C3, HEAD, 3, pad=1, bias=False) + BN + ReLU + Dropout(eval)
    p["head_w"] = conv_w(ks[7], HEAD, C3, 3, 3)
    p["head_bn"] = bn(ks[8], HEAD)
    # replaced final conv: Conv2d(HEAD, num_classes, k=1, stride=1, padding=1, bias=True)
    p["cls_w"] = conv_w(ks[9], num_classes, HEAD, 1, 1)
    p["cls_b"] = 0.01 * jax.random.normal(ks[10], (num_classes,), jnp.float32)
    return p


# ---------------------------------------------------------------------------
# Forward pass (returns the dict's 'out' tensor, i.e. upsampled to input size)
# ---------------------------------------------------------------------------

def torchvision_model_forward(params, x):
    N, Cin, H, W = x.shape
    h = x.transpose(0, 2, 3, 1)                      # NCHW -> NHWC (boundary only)

    # backbone: replaced conv1 (k7, s2, p=stride=2) + BN + ReLU
    s, b = _fold_bn(*params["conv1_bn"], conv_bias=params["conv1_b"])
    h = conv2d(h, params["conv1_w"], s, b, stride=2, pad=2, relu=True)
    # maxpool 3x3, stride 2, pad 1
    h = maxpool2d(h, k=3, stride=2, pad=1)
    # backbone body (reduced ResNet stand-in)
    s, b = _fold_bn(*params["body1_bn"])
    h = conv2d(h, params["body1_w"], s, b, stride=1, pad=1, relu=True)
    s, b = _fold_bn(*params["body2_bn"])
    h = conv2d(h, params["body2_w"], s, b, stride=1, pad=1, relu=True)

    # classifier head: 3x3 conv + BN + ReLU (+ dropout == identity in eval)
    s, b = _fold_bn(*params["head_bn"])
    h = conv2d(h, params["head_w"], s, b, stride=1, pad=1, relu=True)
    # replaced final conv: 1x1 conv, stride 1, padding 1 (grows spatial dims by 2)
    h = conv2d(h, params["cls_w"], None, params["cls_b"],
               stride=1, pad=1, relu=False, out_dtype=jnp.float32)

    # result['out'] = bilinear upsample to input size (align_corners=False), NCHW out
    h = h.transpose(0, 3, 1, 2)                      # small pre-upsample tensor
    out = bilinear_upsample_nchw(h, H, W)
    return out


# ---------------------------------------------------------------------------
# Demo
# ---------------------------------------------------------------------------

if __name__ == "__main__":
    key = jax.random.PRNGKey(0)
    k_param, k_x = jax.random.split(key)

    batch, in_channels, spatial, num_classes = 2, 4, 16, 3
    params = init_params(k_param, in_channels=in_channels, num_classes=num_classes)
    x = jax.random.normal(k_x, (batch, in_channels, spatial, spatial), jnp.float32)

    fwd = jax.jit(torchvision_model_forward)
    out = fwd(params, x)
    out = jax.block_until_ready(out)

    assert out.shape == (batch, num_classes, spatial, spatial), out.shape
    assert jnp.all(jnp.isfinite(out))
    print("KERNEL_OK")
</pallas_src>

<mosaic_0001>
module attributes {stable_mosaic.version = 11 : i64} {
  func.func @_matmul_kernel(%arg0: i32, %arg1: i32, %arg2: i32, %arg3: memref<104x256xbf16, #tpu.memory_space<vmem>>, %arg4: memref<256x128xbf16, #tpu.memory_space<vmem>>, %arg5: memref<1x128xf32, #tpu.memory_space<vmem>>, %arg6: memref<1x128xf32, #tpu.memory_space<vmem>>, %arg7: memref<104x128xbf16, #tpu.memory_space<vmem>>, %arg8: memref<104x128xf32, #tpu.memory_space<vmem>>) attributes {dimension_semantics = [#tpu.dimension_semantics<parallel>, #tpu.dimension_semantics<parallel>, #tpu.dimension_semantics<arbitrary>], iteration_bounds = array<i64: 1, 1, 1>, scalar_prefetch = 0 : i64, scratch_operands = 1 : i64, tpu.core_type = #tpu.core_type<tc>, window_params = [{transform_indices = @transform_0, window_bounds = array<i64: 104, 256>}, {transform_indices = @transform_1, window_bounds = array<i64: 256, 128>}, {transform_indices = @transform_2, window_bounds = array<i64: 1, 128>}, {transform_indices = @transform_3, window_bounds = array<i64: 1, 128>}, {transform_indices = @transform_4, window_bounds = array<i64: 104, 128>}]} {
    %c0_i32 = arith.constant 0 : i32
    %0 = arith.cmpi eq, %arg2, %c0_i32 : i32
    %1 = arith.extui %0 : i1 to i32
    %c0_i32_0 = arith.constant 0 : i32
    %2 = arith.cmpi ne, %1, %c0_i32_0 : i32
    scf.if %2 {
      %cst_10 = arith.constant 0.000000e+00 : f32
      %12 = vector.broadcast %cst_10 : f32 to vector<104x128xf32>
      %c0_11 = arith.constant 0 : index
      %c0_12 = arith.constant 0 : index
      %13 = vector.load %arg8[%c0_11, %c0_12] : memref<104x128xf32, #tpu.memory_space<vmem>>, vector<104x128xf32>
      tpu.vector_store %arg8[%c0_11, %c0_12], %12 {strides = array<i32>} : memref<104x128xf32, #tpu.memory_space<vmem>>, vector<104x128xf32>,
    } else {
    }
    %c0 = arith.constant 0 : index
    %c0_1 = arith.constant 0 : index
    %3 = vector.load %arg8[%c0, %c0_1] : memref<104x128xf32, #tpu.memory_space<vmem>>, vector<104x128xf32>
    %c0_2 = arith.constant 0 : index
    %c0_3 = arith.constant 0 : index
    %4 = vector.load %arg3[%c0_2, %c0_3] : memref<104x256xbf16, #tpu.memory_space<vmem>>, vector<104x256xbf16>
    %c0_4 = arith.constant 0 : index
    %c0_5 = arith.constant 0 : index
    %5 = vector.load %arg4[%c0_4, %c0_5] : memref<256x128xbf16, #tpu.memory_space<vmem>>, vector<256x128xbf16>
    %cst = arith.constant dense<0.000000e+00> : vector<104x128xf32>
    %6 = tpu.matmul %4, %5, %cst {dimension_numbers = #tpu.dot_dimension_numbers<[1], [0], [0], [1], [0, 0, 1, 1], [], []>} : vector<104x256xbf16>, vector<256x128xbf16>, vector<104x128xf32> -> vector<104x128xf32>
    %7 = arith.addf %3, %6 : vector<104x128xf32>
    %c0_6 = arith.constant 0 : index
    %c0_7 = arith.constant 0 : index
    %8 = vector.load %arg8[%c0_6, %c0_7] : memref<104x128xf32, #tpu.memory_space<vmem>>, vector<104x128xf32>
    tpu.vector_store %arg8[%c0_6, %c0_7], %7 {strides = array<i32>} : memref<104x128xf32, #tpu.memory_space<vmem>>, vector<104x128xf32>,
    %c0_i32_8 = arith.constant 0 : i32
    %9 = arith.cmpi eq, %arg2, %c0_i32_8 : i32
    %10 = arith.extui %9 : i1 to i32
    %c0_i32_9 = arith.constant 0 : i32
    %11 = arith.cmpi ne, %10, %c0_i32_9 : i32
    scf.if %11 {
      %c0_10 = arith.constant 0 : index
      %c0_11 = arith.constant 0 : index
      %12 = vector.load %arg8[%c0_10, %c0_11] : memref<104x128xf32, #tpu.memory_space<vmem>>, vector<104x128xf32>
      %c0_12 = arith.constant 0 : index
      %c0_13 = arith.constant 0 : index
      %13 = vector.load %arg5[%c0_12, %c0_13] : memref<1x128xf32, #tpu.memory_space<vmem>>, vector<1x128xf32>
      %14 = vector.broadcast %13 : vector<1x128xf32> to vector<104x128xf32>
      %15 = arith.mulf %12, %14 : vector<104x128xf32>
      %c0_14 = arith.constant 0 : index
      %c0_15 = arith.constant 0 : index
      %16 = vector.load %arg6[%c0_14, %c0_15] : memref<1x128xf32, #tpu.memory_space<vmem>>, vector<1x128xf32>
      %17 = vector.broadcast %16 : vector<1x128xf32> to vector<104x128xf32>
      %18 = arith.addf %15, %17 : vector<104x128xf32>
      %cst_16 = arith.constant 0.000000e+00 : f32
      %19 = vector.broadcast %cst_16 : f32 to vector<104x128xf32>
      %20 = arith.maximumf %18, %19 : vector<104x128xf32>
      %21 = arith.truncf %20 : vector<104x128xf32> to vector<104x128xbf16>
      %c0_17 = arith.constant 0 : index
      %c0_18 = arith.constant 0 : index
      %22 = vector.load %arg7[%c0_17, %c0_18] : memref<104x128xbf16, #tpu.memory_space<vmem>>, vector<104x128xbf16>
      tpu.vector_store %arg7[%c0_17, %c0_18], %21 {strides = array<i32>} : memref<104x128xbf16, #tpu.memory_space<vmem>>, vector<104x128xbf16>,
    } else {
    }
    return
  }
  func.func @transform_0(%arg0: i32, %arg1: i32, %arg2: i32) -> (i32, i32) {
    %c0_i32 = arith.constant 0 : i32
    return %arg0, %arg2 : i32, i32
  }
  func.func @transform_1(%arg0: i32, %arg1: i32, %arg2: i32) -> (i32, i32) {
    %c0_i32 = arith.constant 0 : i32
    return %arg2, %arg1 : i32, i32
  }
  func.func @transform_2(%arg0: i32, %arg1: i32, %arg2: i32) -> (i32, i32) {
    %c0_i32 = arith.constant 0 : i32
    %c0_i32_0 = arith.constant 0 : i32
    return %c0_i32, %arg1 : i32, i32
  }
  func.func @transform_3(%arg0: i32, %arg1: i32, %arg2: i32) -> (i32, i32) {
    %c0_i32 = arith.constant 0 : i32
    %c0_i32_0 = arith.constant 0 : i32
    return %c0_i32, %arg1 : i32, i32
  }
  func.func @transform_4(%arg0: i32, %arg1: i32, %arg2: i32) -> (i32, i32) {
    %c0_i32 = arith.constant 0 : i32
    return %arg0, %arg1 : i32, i32
  }
}

module attributes {stable_mosaic.version = 11 : i64} {
  func.func @_maxpool_kernel(%arg0: i32, %arg1: memref<1x4x4x16xbf16, #tpu.memory_space<vmem>>, %arg2: memref<1x4x4x16xbf16, #tpu.memory_space<vmem>>, %arg3: memref<1x4x4x16xbf16, #tpu.memory_space<vmem>>, %arg4: memref<1x4x4x16xbf16, #tpu.memory_space<vmem>>, %arg5: memref<1x4x4x16xbf16, #tpu.memory_space<vmem>>, %arg6: memref<1x4x4x16xbf16, #tpu.memory_space<vmem>>, %arg7: memref<1x4x4x16xbf16, #tpu.memory_space<vmem>>, %arg8: memref<1x4x4x16xbf16, #tpu.memory_space<vmem>>, %arg9: memref<1x4x4x16xbf16, #tpu.memory_space<vmem>>, %arg10: memref<1x4x4x16xbf16, #tpu.memory_space<vmem>>) attributes {dimension_semantics = [#tpu.dimension_semantics<parallel>], iteration_bounds = array<i64: 2>, scalar_prefetch = 0 : i64, scratch_operands = 0 : i64, tpu.core_type = #tpu.core_type<tc>, window_params = [{transform_indices = @transform_0, window_bounds = array<i64: 1, 4, 4, 16>}, {transform_indices = @transform_1, window_bounds = array<i64: 1, 4, 4, 16>}, {transform_indices = @transform_2, window_bounds = array<i64: 1, 4, 4, 16>}, {transform_indices = @transform_3, window_bounds = array<i64: 1, 4, 4, 16>}, {transform_indices = @transform_4, window_bounds = array<i64: 1, 4, 4, 16>}, {transform_indices = @transform_5, window_bounds = array<i64: 1, 4, 4, 16>}, {transform_indices = @transform_6, window_bounds = array<i64: 1, 4, 4, 16>}, {transform_indices = @transform_7, window_bounds = array<i64: 1, 4, 4, 16>}, {transform_indices = @transform_8, window_bounds = array<i64: 1, 4, 4, 16>}, {transform_indices = @transform_9, window_bounds = array<i64: 1, 4, 4, 16>}]} {
    %c0 = arith.constant 0 : index
    %c0_0 = arith.constant 0 : index
    %c0_1 = arith.constant 0 : index
    %c0_2 = arith.constant 0 : index
    %0 = vector.load %arg1[%c0, %c0_0, %c0_1, %c0_2] : memref<1x4x4x16xbf16, #tpu.memory_space<vmem>>, vector<1x4x4x16xbf16>
    %c0_3 = arith.constant 0 : index
    %c0_4 = arith.constant 0 : index
    %c0_5 = arith.constant 0 : index
    %c0_6 = arith.constant 0 : index
    %1 = vector.load %arg2[%c0_3, %c0_4, %c0_5, %c0_6] : memref<1x4x4x16xbf16, #tpu.memory_space<vmem>>, vector<1x4x4x16xbf16>
    %2 = arith.maximumf %0, %1 : vector<1x4x4x16xbf16>
    %c0_7 = arith.constant 0 : index
    %c0_8 = arith.constant 0 : index
    %c0_9 = arith.constant 0 : index
    %c0_10 = arith.constant 0 : index
    %3 = vector.load %arg3[%c0_7, %c0_8, %c0_9, %c0_10] : memref<1x4x4x16xbf16, #tpu.memory_space<vmem>>, vector<1x4x4x16xbf16>
    %4 = arith.maximumf %2, %3 : vector<1x4x4x16xbf16>
    %c0_11 = arith.constant 0 : index
    %c0_12 = arith.constant 0 : index
    %c0_13 = arith.constant 0 : index
    %c0_14 = arith.constant 0 : index
    %5 = vector.load %arg4[%c0_11, %c0_12, %c0_13, %c0_14] : memref<1x4x4x16xbf16, #tpu.memory_space<vmem>>, vector<1x4x4x16xbf16>
    %6 = arith.maximumf %4, %5 : vector<1x4x4x16xbf16>
    %c0_15 = arith.constant 0 : index
    %c0_16 = arith.constant 0 : index
    %c0_17 = arith.constant 0 : index
    %c0_18 = arith.constant 0 : index
    %7 = vector.load %arg5[%c0_15, %c0_16, %c0_17, %c0_18] : memref<1x4x4x16xbf16, #tpu.memory_space<vmem>>, vector<1x4x4x16xbf16>
    %8 = arith.maximumf %6, %7 : vector<1x4x4x16xbf16>
    %c0_19 = arith.constant 0 : index
    %c0_20 = arith.constant 0 : index
    %c0_21 = arith.constant 0 : index
    %c0_22 = arith.constant 0 : index
    %9 = vector.load %arg6[%c0_19, %c0_20, %c0_21, %c0_22] : memref<1x4x4x16xbf16, #tpu.memory_space<vmem>>, vector<1x4x4x16xbf16>
    %10 = arith.maximumf %8, %9 : vector<1x4x4x16xbf16>
    %c0_23 = arith.constant 0 : index
    %c0_24 = arith.constant 0 : index
    %c0_25 = arith.constant 0 : index
    %c0_26 = arith.constant 0 : index
    %11 = vector.load %arg7[%c0_23, %c0_24, %c0_25, %c0_26] : memref<1x4x4x16xbf16, #tpu.memory_space<vmem>>, vector<1x4x4x16xbf16>
    %12 = arith.maximumf %10, %11 : vector<1x4x4x16xbf16>
    %c0_27 = arith.constant 0 : index
    %c0_28 = arith.constant 0 : index
    %c0_29 = arith.constant 0 : index
    %c0_30 = arith.constant 0 : index
    %13 = vector.load %arg8[%c0_27, %c0_28, %c0_29, %c0_30] : memref<1x4x4x16xbf16, #tpu.memory_space<vmem>>, vector<1x4x4x16xbf16>
    %14 = arith.maximumf %12, %13 : vector<1x4x4x16xbf16>
    %c0_31 = arith.constant 0 : index
    %c0_32 = arith.constant 0 : index
    %c0_33 = arith.constant 0 : index
    %c0_34 = arith.constant 0 : index
    %15 = vector.load %arg9[%c0_31, %c0_32, %c0_33, %c0_34] : memref<1x4x4x16xbf16, #tpu.memory_space<vmem>>, vector<1x4x4x16xbf16>
    %16 = arith.maximumf %14, %15 : vector<1x4x4x16xbf16>
    %c0_35 = arith.constant 0 : index
    %c0_36 = arith.constant 0 : index
    %c0_37 = arith.constant 0 : index
    %c0_38 = arith.constant 0 : index
    %17 = vector.load %arg10[%c0_35, %c0_36, %c0_37, %c0_38] : memref<1x4x4x16xbf16, #tpu.memory_space<vmem>>, vector<1x4x4x16xbf16>
    tpu.vector_store %arg10[%c0_35, %c0_36, %c0_37, %c0_38], %16 {strides = array<i32>} : memref<1x4x4x16xbf16, #tpu.memory_space<vmem>>, vector<1x4x4x16xbf16>,
    return
  }
  func.func @transform_0(%arg0: i32) -> (i32, i32, i32, i32) {
    %c0_i32 = arith.constant 0 : i32
    %c0_i32_0 = arith.constant 0 : i32
    %c0_i32_1 = arith.constant 0 : i32
    %c0_i32_2 = arith.constant 0 : i32
    return %arg0, %c0_i32, %c0_i32_0, %c0_i32_1 : i32, i32, i32, i32
  }
  func.func @transform_1(%arg0: i32) -> (i32, i32, i32, i32) {
    %c0_i32 = arith.constant 0 : i32
    %c0_i32_0 = arith.constant 0 : i32
    %c0_i32_1 = arith.constant 0 : i32
    %c0_i32_2 = arith.constant 0 : i32
    return %arg0, %c0_i32, %c0_i32_0, %c0_i32_1 : i32, i32, i32, i32
  }
  func.func @transform_2(%arg0: i32) -> (i32, i32, i32, i32) {
    %c0_i32 = arith.constant 0 : i32
    %c0_i32_0 = arith.constant 0 : i32
    %c0_i32_1 = arith.constant 0 : i32
    %c0_i32_2 = arith.constant 0 : i32
    return %arg0, %c0_i32, %c0_i32_0, %c0_i32_1 : i32, i32, i32, i32
  }
  func.func @transform_3(%arg0: i32) -> (i32, i32, i32, i32) {
    %c0_i32 = arith.constant 0 : i32
    %c0_i32_0 = arith.constant 0 : i32
    %c0_i32_1 = arith.constant 0 : i32
    %c0_i32_2 = arith.constant 0 : i32
    return %arg0, %c0_i32, %c0_i32_0, %c0_i32_1 : i32, i32, i32, i32
  }
  func.func @transform_4(%arg0: i32) -> (i32, i32, i32, i32) {
    %c0_i32 = arith.constant 0 : i32
    %c0_i32_0 = arith.constant 0 : i32
    %c0_i32_1 = arith.constant 0 : i32
    %c0_i32_2 = arith.constant 0 : i32
    return %arg0, %c0_i32, %c0_i32_0, %c0_i32_1 : i32, i32, i32, i32
  }
  func.func @transform_5(%arg0: i32) -> (i32, i32, i32, i32) {
    %c0_i32 = arith.constant 0 : i32
    %c0_i32_0 = arith.constant 0 : i32
    %c0_i32_1 = arith.constant 0 : i32
    %c0_i32_2 = arith.constant 0 : i32
    return %arg0, %c0_i32, %c0_i32_0, %c0_i32_1 : i32, i32, i32, i32
  }
  func.func @transform_6(%arg0: i32) -> (i32, i32, i32, i32) {
    %c0_i32 = arith.constant 0 : i32
    %c0_i32_0 = arith.constant 0 : i32
    %c0_i32_1 = arith.constant 0 : i32
    %c0_i32_2 = arith.constant 0 : i32
    return %arg0, %c0_i32, %c0_i32_0, %c0_i32_1 : i32, i32, i32, i32
  }
  func.func @transform_7(%arg0: i32) -> (i32, i32, i32, i32) {
    %c0_i32 = arith.constant 0 : i32
    %c0_i32_0 = arith.constant 0 : i32
    %c0_i32_1 = arith.constant 0 : i32
    %c0_i32_2 = arith.constant 0 : i32
    return %arg0, %c0_i32, %c0_i32_0, %c0_i32_1 : i32, i32, i32, i32
  }
  func.func @transform_8(%arg0: i32) -> (i32, i32, i32, i32) {
    %c0_i32 = arith.constant 0 : i32
    %c0_i32_0 = arith.constant 0 : i32
    %c0_i32_1 = arith.constant 0 : i32
    %c0_i32_2 = arith.constant 0 : i32
    return %arg0, %c0_i32, %c0_i32_0, %c0_i32_1 : i32, i32, i32, i32
  }
  func.func @transform_9(%arg0: i32) -> (i32, i32, i32, i32) {
    %c0_i32 = arith.constant 0 : i32
    %c0_i32_0 = arith.constant 0 : i32
    %c0_i32_1 = arith.constant 0 : i32
    %c0_i32_2 = arith.constant 0 : i32
    return %arg0, %c0_i32, %c0_i32_0, %c0_i32_1 : i32, i32, i32, i32
  }
}

module attributes {stable_mosaic.version = 11 : i64} {
  func.func @_matmul_kernel(%arg0: i32, %arg1: i32, %arg2: i32, %arg3: memref<32x256xbf16, #tpu.memory_space<vmem>>, %arg4: memref<256x128xbf16, #tpu.memory_space<vmem>>, %arg5: memref<1x128xf32, #tpu.memory_space<vmem>>, %arg6: memref<1x128xf32, #tpu.memory_space<vmem>>, %arg7: memref<32x128xbf16, #tpu.memory_space<vmem>>, %arg8: memref<32x128xf32, #tpu.memory_space<vmem>>) attributes {dimension_semantics = [#tpu.dimension_semantics<parallel>, #tpu.dimension_semantics<parallel>, #tpu.dimension_semantics<arbitrary>], iteration_bounds = array<i64: 1, 1, 1>, scalar_prefetch = 0 : i64, scratch_operands = 1 : i64, tpu.core_type = #tpu.core_type<tc>, window_params = [{transform_indices = @transform_0, window_bounds = array<i64: 32, 256>}, {transform_indices = @transform_1, window_bounds = array<i64: 256, 128>}, {transform_indices = @transform_2, window_bounds = array<i64: 1, 128>}, {transform_indices = @transform_3, window_bounds = array<i64: 1, 128>}, {transform_indices = @transform_4, window_bounds = array<i64: 32, 128>}]} {
    %c0_i32 = arith.constant 0 : i32
    %0 = arith.cmpi eq, %arg2, %c0_i32 : i32
    %1 = arith.extui %0 : i1 to i32
    %c0_i32_0 = arith.constant 0 : i32
    %2 = arith.cmpi ne, %1, %c0_i32_0 : i32
    scf.if %2 {
      %cst_10 = arith.constant 0.000000e+00 : f32
      %12 = vector.broadcast %cst_10 : f32 to vector<32x128xf32>
      %c0_11 = arith.constant 0 : index
      %c0_12 = arith.constant 0 : index
      %13 = vector.load %arg8[%c0_11, %c0_12] : memref<32x128xf32, #tpu.memory_space<vmem>>, vector<32x128xf32>
      tpu.vector_store %arg8[%c0_11, %c0_12], %12 {strides = array<i32>} : memref<32x128xf32, #tpu.memory_space<vmem>>, vector<32x128xf32>,
    } else {
    }
    %c0 = arith.constant 0 : index
    %c0_1 = arith.constant 0 : index
    %3 = vector.load %arg8[%c0, %c0_1] : memref<32x128xf32, #tpu.memory_space<vmem>>, vector<32x128xf32>
    %c0_2 = arith.constant 0 : index
    %c0_3 = arith.constant 0 : index
    %4 = vector.load %arg3[%c0_2, %c0_3] : memref<32x256xbf16, #tpu.memory_space<vmem>>, vector<32x256xbf16>
    %c0_4 = arith.constant 0 : index
    %c0_5 = arith.constant 0 : index
    %5 = vector.load %arg4[%c0_4, %c0_5] : memref<256x128xbf16, #tpu.memory_space<vmem>>, vector<256x128xbf16>
    %cst = arith.constant dense<0.000000e+00> : vector<32x128xf32>
    %6 = tpu.matmul %4, %5, %cst {dimension_numbers = #tpu.dot_dimension_numbers<[1], [0], [0], [1], [0, 0, 1, 1], [], []>} : vector<32x256xbf16>, vector<256x128xbf16>, vector<32x128xf32> -> vector<32x128xf32>
    %7 = arith.addf %3, %6 : vector<32x128xf32>
    %c0_6 = arith.constant 0 : index
    %c0_7 = arith.constant 0 : index
    %8 = vector.load %arg8[%c0_6, %c0_7] : memref<32x128xf32, #tpu.memory_space<vmem>>, vector<32x128xf32>
    tpu.vector_store %arg8[%c0_6, %c0_7], %7 {strides = array<i32>} : memref<32x128xf32, #tpu.memory_space<vmem>>, vector<32x128xf32>,
    %c0_i32_8 = arith.constant 0 : i32
    %9 = arith.cmpi eq, %arg2, %c0_i32_8 : i32
    %10 = arith.extui %9 : i1 to i32
    %c0_i32_9 = arith.constant 0 : i32
    %11 = arith.cmpi ne, %10, %c0_i32_9 : i32
    scf.if %11 {
      %c0_10 = arith.constant 0 : index
      %c0_11 = arith.constant 0 : index
      %12 = vector.load %arg8[%c0_10, %c0_11] : memref<32x128xf32, #tpu.memory_space<vmem>>, vector<32x128xf32>
      %c0_12 = arith.constant 0 : index
      %c0_13 = arith.constant 0 : index
      %13 = vector.load %arg5[%c0_12, %c0_13] : memref<1x128xf32, #tpu.memory_space<vmem>>, vector<1x128xf32>
      %14 = vector.broadcast %13 : vector<1x128xf32> to vector<32x128xf32>
      %15 = arith.mulf %12, %14 : vector<32x128xf32>
      %c0_14 = arith.constant 0 : index
      %c0_15 = arith.constant 0 : index
      %16 = vector.load %arg6[%c0_14, %c0_15] : memref<1x128xf32, #tpu.memory_space<vmem>>, vector<1x128xf32>
      %17 = vector.broadcast %16 : vector<1x128xf32> to vector<32x128xf32>
      %18 = arith.addf %15, %17 : vector<32x128xf32>
      %cst_16 = arith.constant 0.000000e+00 : f32
      %19 = vector.broadcast %cst_16 : f32 to vector<32x128xf32>
      %20 = arith.maximumf %18, %19 : vector<32x128xf32>
      %21 = arith.truncf %20 : vector<32x128xf32> to vector<32x128xbf16>
      %c0_17 = arith.constant 0 : index
      %c0_18 = arith.constant 0 : index
      %22 = vector.load %arg7[%c0_17, %c0_18] : memref<32x128xbf16, #tpu.memory_space<vmem>>, vector<32x128xbf16>
      tpu.vector_store %arg7[%c0_17, %c0_18], %21 {strides = array<i32>} : memref<32x128xbf16, #tpu.memory_space<vmem>>, vector<32x128xbf16>,
    } else {
    }
    return
  }
  func.func @transform_0(%arg0: i32, %arg1: i32, %arg2: i32) -> (i32, i32) {
    %c0_i32 = arith.constant 0 : i32
    return %arg0, %arg2 : i32, i32
  }
  func.func @transform_1(%arg0: i32, %arg1: i32, %arg2: i32) -> (i32, i32) {
    %c0_i32 = arith.constant 0 : i32
    return %arg2, %arg1 : i32, i32
  }
  func.func @transform_2(%arg0: i32, %arg1: i32, %arg2: i32) -> (i32, i32) {
    %c0_i32 = arith.constant 0 : i32
    %c0_i32_0 = arith.constant 0 : i32
    return %c0_i32, %arg1 : i32, i32
  }
  func.func @transform_3(%arg0: i32, %arg1: i32, %arg2: i32) -> (i32, i32) {
    %c0_i32 = arith.constant 0 : i32
    %c0_i32_0 = arith.constant 0 : i32
    return %c0_i32, %arg1 : i32, i32
  }
  func.func @transform_4(%arg0: i32, %arg1: i32, %arg2: i32) -> (i32, i32) {
    %c0_i32 = arith.constant 0 : i32
    return %arg0, %arg1 : i32, i32
  }
}

module attributes {stable_mosaic.version = 11 : i64} {
  func.func @_matmul_kernel(%arg0: i32, %arg1: i32, %arg2: i32, %arg3: memref<32x384xbf16, #tpu.memory_space<vmem>>, %arg4: memref<384x128xbf16, #tpu.memory_space<vmem>>, %arg5: memref<1x128xf32, #tpu.memory_space<vmem>>, %arg6: memref<1x128xf32, #tpu.memory_space<vmem>>, %arg7: memref<32x128xbf16, #tpu.memory_space<vmem>>, %arg8: memref<32x128xf32, #tpu.memory_space<vmem>>) attributes {dimension_semantics = [#tpu.dimension_semantics<parallel>, #tpu.dimension_semantics<parallel>, #tpu.dimension_semantics<arbitrary>], iteration_bounds = array<i64: 1, 1, 1>, scalar_prefetch = 0 : i64, scratch_operands = 1 : i64, tpu.core_type = #tpu.core_type<tc>, window_params = [{transform_indices = @transform_0, window_bounds = array<i64: 32, 384>}, {transform_indices = @transform_1, window_bounds = array<i64: 384, 128>}, {transform_indices = @transform_2, window_bounds = array<i64: 1, 128>}, {transform_indices = @transform_3, window_bounds = array<i64: 1, 128>}, {transform_indices = @transform_4, window_bounds = array<i64: 32, 128>}]} {
    %c0_i32 = arith.constant 0 : i32
    %0 = arith.cmpi eq, %arg2, %c0_i32 : i32
    %1 = arith.extui %0 : i1 to i32
    %c0_i32_0 = arith.constant 0 : i32
    %2 = arith.cmpi ne, %1, %c0_i32_0 : i32
    scf.if %2 {
      %cst_10 = arith.constant 0.000000e+00 : f32
      %12 = vector.broadcast %cst_10 : f32 to vector<32x128xf32>
      %c0_11 = arith.constant 0 : index
      %c0_12 = arith.constant 0 : index
      %13 = vector.load %arg8[%c0_11, %c0_12] : memref<32x128xf32, #tpu.memory_space<vmem>>, vector<32x128xf32>
      tpu.vector_store %arg8[%c0_11, %c0_12], %12 {strides = array<i32>} : memref<32x128xf32, #tpu.memory_space<vmem>>, vector<32x128xf32>,
    } else {
    }
    %c0 = arith.constant 0 : index
    %c0_1 = arith.constant 0 : index
    %3 = vector.load %arg8[%c0, %c0_1] : memref<32x128xf32, #tpu.memory_space<vmem>>, vector<32x128xf32>
    %c0_2 = arith.constant 0 : index
    %c0_3 = arith.constant 0 : index
    %4 = vector.load %arg3[%c0_2, %c0_3] : memref<32x384xbf16, #tpu.memory_space<vmem>>, vector<32x384xbf16>
    %c0_4 = arith.constant 0 : index
    %c0_5 = arith.constant 0 : index
    %5 = vector.load %arg4[%c0_4, %c0_5] : memref<384x128xbf16, #tpu.memory_space<vmem>>, vector<384x128xbf16>
    %cst = arith.constant dense<0.000000e+00> : vector<32x128xf32>
    %6 = tpu.matmul %4, %5, %cst {dimension_numbers = #tpu.dot_dimension_numbers<[1], [0], [0], [1], [0, 0, 1, 1], [], []>} : vector<32x384xbf16>, vector<384x128xbf16>, vector<32x128xf32> -> vector<32x128xf32>
    %7 = arith.addf %3, %6 : vector<32x128xf32>
    %c0_6 = arith.constant 0 : index
    %c0_7 = arith.constant 0 : index
    %8 = vector.load %arg8[%c0_6, %c0_7] : memref<32x128xf32, #tpu.memory_space<vmem>>, vector<32x128xf32>
    tpu.vector_store %arg8[%c0_6, %c0_7], %7 {strides = array<i32>} : memref<32x128xf32, #tpu.memory_space<vmem>>, vector<32x128xf32>,
    %c0_i32_8 = arith.constant 0 : i32
    %9 = arith.cmpi eq, %arg2, %c0_i32_8 : i32
    %10 = arith.extui %9 : i1 to i32
    %c0_i32_9 = arith.constant 0 : i32
    %11 = arith.cmpi ne, %10, %c0_i32_9 : i32
    scf.if %11 {
      %c0_10 = arith.constant 0 : index
      %c0_11 = arith.constant 0 : index
      %12 = vector.load %arg8[%c0_10, %c0_11] : memref<32x128xf32, #tpu.memory_space<vmem>>, vector<32x128xf32>
      %c0_12 = arith.constant 0 : index
      %c0_13 = arith.constant 0 : index
      %13 = vector.load %arg5[%c0_12, %c0_13] : memref<1x128xf32, #tpu.memory_space<vmem>>, vector<1x128xf32>
      %14 = vector.broadcast %13 : vector<1x128xf32> to vector<32x128xf32>
      %15 = arith.mulf %12, %14 : vector<32x128xf32>
      %c0_14 = arith.constant 0 : index
      %c0_15 = arith.constant 0 : index
      %16 = vector.load %arg6[%c0_14, %c0_15] : memref<1x128xf32, #tpu.memory_space<vmem>>, vector<1x128xf32>
      %17 = vector.broadcast %16 : vector<1x128xf32> to vector<32x128xf32>
      %18 = arith.addf %15, %17 : vector<32x128xf32>
      %cst_16 = arith.constant 0.000000e+00 : f32
      %19 = vector.broadcast %cst_16 : f32 to vector<32x128xf32>
      %20 = arith.maximumf %18, %19 : vector<32x128xf32>
      %21 = arith.truncf %20 : vector<32x128xf32> to vector<32x128xbf16>
      %c0_17 = arith.constant 0 : index
      %c0_18 = arith.constant 0 : index
      %22 = vector.load %arg7[%c0_17, %c0_18] : memref<32x128xbf16, #tpu.memory_space<vmem>>, vector<32x128xbf16>
      tpu.vector_store %arg7[%c0_17, %c0_18], %21 {strides = array<i32>} : memref<32x128xbf16, #tpu.memory_space<vmem>>, vector<32x128xbf16>,
    } else {
    }
    return
  }
  func.func @transform_0(%arg0: i32, %arg1: i32, %arg2: i32) -> (i32, i32) {
    %c0_i32 = arith.constant 0 : i32
    return %arg0, %arg2 : i32, i32
  }
  func.func @transform_1(%arg0: i32, %arg1: i32, %arg2: i32) -> (i32, i32) {
    %c0_i32 = arith.constant 0 : i32
    return %arg2, %arg1 : i32, i32
  }
  func.func @transform_2(%arg0: i32, %arg1: i32, %arg2: i32) -> (i32, i32) {
    %c0_i32 = arith.constant 0 : i32
    %c0_i32_0 = arith.constant 0 : i32
    return %c0_i32, %arg1 : i32, i32
  }
  func.func @transform_3(%arg0: i32, %arg1: i32, %arg2: i32) -> (i32, i32) {
    %c0_i32 = arith.constant 0 : i32
    %c0_i32_0 = arith.constant 0 : i32
    return %c0_i32, %arg1 : i32, i32
  }
  func.func @transform_4(%arg0: i32, %arg1: i32, %arg2: i32) -> (i32, i32) {
    %c0_i32 = arith.constant 0 : i32
    return %arg0, %arg1 : i32, i32
  }
}

module attributes {stable_mosaic.version = 11 : i64} {
  func.func @_matmul_kernel(%arg0: i32, %arg1: i32, %arg2: i32, %arg3: memref<32x640xbf16, #tpu.memory_space<vmem>>, %arg4: memref<640x128xbf16, #tpu.memory_space<vmem>>, %arg5: memref<1x128xf32, #tpu.memory_space<vmem>>, %arg6: memref<1x128xf32, #tpu.memory_space<vmem>>, %arg7: memref<32x128xbf16, #tpu.memory_space<vmem>>, %arg8: memref<32x128xf32, #tpu.memory_space<vmem>>) attributes {dimension_semantics = [#tpu.dimension_semantics<parallel>, #tpu.dimension_semantics<parallel>, #tpu.dimension_semantics<arbitrary>], iteration_bounds = array<i64: 1, 1, 1>, scalar_prefetch = 0 : i64, scratch_operands = 1 : i64, tpu.core_type = #tpu.core_type<tc>, window_params = [{transform_indices = @transform_0, window_bounds = array<i64: 32, 640>}, {transform_indices = @transform_1, window_bounds = array<i64: 640, 128>}, {transform_indices = @transform_2, window_bounds = array<i64: 1, 128>}, {transform_indices = @transform_3, window_bounds = array<i64: 1, 128>}, {transform_indices = @transform_4, window_bounds = array<i64: 32, 128>}]} {
    %c0_i32 = arith.constant 0 : i32
    %0 = arith.cmpi eq, %arg2, %c0_i32 : i32
    %1 = arith.extui %0 : i1 to i32
    %c0_i32_0 = arith.constant 0 : i32
    %2 = arith.cmpi ne, %1, %c0_i32_0 : i32
    scf.if %2 {
      %cst_10 = arith.constant 0.000000e+00 : f32
      %12 = vector.broadcast %cst_10 : f32 to vector<32x128xf32>
      %c0_11 = arith.constant 0 : index
      %c0_12 = arith.constant 0 : index
      %13 = vector.load %arg8[%c0_11, %c0_12] : memref<32x128xf32, #tpu.memory_space<vmem>>, vector<32x128xf32>
      tpu.vector_store %arg8[%c0_11, %c0_12], %12 {strides = array<i32>} : memref<32x128xf32, #tpu.memory_space<vmem>>, vector<32x128xf32>,
    } else {
    }
    %c0 = arith.constant 0 : index
    %c0_1 = arith.constant 0 : index
    %3 = vector.load %arg8[%c0, %c0_1] : memref<32x128xf32, #tpu.memory_space<vmem>>, vector<32x128xf32>
    %c0_2 = arith.constant 0 : index
    %c0_3 = arith.constant 0 : index
    %4 = vector.load %arg3[%c0_2, %c0_3] : memref<32x640xbf16, #tpu.memory_space<vmem>>, vector<32x640xbf16>
    %c0_4 = arith.constant 0 : index
    %c0_5 = arith.constant 0 : index
    %5 = vector.load %arg4[%c0_4, %c0_5] : memref<640x128xbf16, #tpu.memory_space<vmem>>, vector<640x128xbf16>
    %cst = arith.constant dense<0.000000e+00> : vector<32x128xf32>
    %6 = tpu.matmul %4, %5, %cst {dimension_numbers = #tpu.dot_dimension_numbers<[1], [0], [0], [1], [0, 0, 1, 1], [], []>} : vector<32x640xbf16>, vector<640x128xbf16>, vector<32x128xf32> -> vector<32x128xf32>
    %7 = arith.addf %3, %6 : vector<32x128xf32>
    %c0_6 = arith.constant 0 : index
    %c0_7 = arith.constant 0 : index
    %8 = vector.load %arg8[%c0_6, %c0_7] : memref<32x128xf32, #tpu.memory_space<vmem>>, vector<32x128xf32>
    tpu.vector_store %arg8[%c0_6, %c0_7], %7 {strides = array<i32>} : memref<32x128xf32, #tpu.memory_space<vmem>>, vector<32x128xf32>,
    %c0_i32_8 = arith.constant 0 : i32
    %9 = arith.cmpi eq, %arg2, %c0_i32_8 : i32
    %10 = arith.extui %9 : i1 to i32
    %c0_i32_9 = arith.constant 0 : i32
    %11 = arith.cmpi ne, %10, %c0_i32_9 : i32
    scf.if %11 {
      %c0_10 = arith.constant 0 : index
      %c0_11 = arith.constant 0 : index
      %12 = vector.load %arg8[%c0_10, %c0_11] : memref<32x128xf32, #tpu.memory_space<vmem>>, vector<32x128xf32>
      %c0_12 = arith.constant 0 : index
      %c0_13 = arith.constant 0 : index
      %13 = vector.load %arg5[%c0_12, %c0_13] : memref<1x128xf32, #tpu.memory_space<vmem>>, vector<1x128xf32>
      %14 = vector.broadcast %13 : vector<1x128xf32> to vector<32x128xf32>
      %15 = arith.mulf %12, %14 : vector<32x128xf32>
      %c0_14 = arith.constant 0 : index
      %c0_15 = arith.constant 0 : index
      %16 = vector.load %arg6[%c0_14, %c0_15] : memref<1x128xf32, #tpu.memory_space<vmem>>, vector<1x128xf32>
      %17 = vector.broadcast %16 : vector<1x128xf32> to vector<32x128xf32>
      %18 = arith.addf %15, %17 : vector<32x128xf32>
      %cst_16 = arith.constant 0.000000e+00 : f32
      %19 = vector.broadcast %cst_16 : f32 to vector<32x128xf32>
      %20 = arith.maximumf %18, %19 : vector<32x128xf32>
      %21 = arith.truncf %20 : vector<32x128xf32> to vector<32x128xbf16>
      %c0_17 = arith.constant 0 : index
      %c0_18 = arith.constant 0 : index
      %22 = vector.load %arg7[%c0_17, %c0_18] : memref<32x128xbf16, #tpu.memory_space<vmem>>, vector<32x128xbf16>
      tpu.vector_store %arg7[%c0_17, %c0_18], %21 {strides = array<i32>} : memref<32x128xbf16, #tpu.memory_space<vmem>>, vector<32x128xbf16>,
    } else {
    }
    return
  }
  func.func @transform_0(%arg0: i32, %arg1: i32, %arg2: i32) -> (i32, i32) {
    %c0_i32 = arith.constant 0 : i32
    return %arg0, %arg2 : i32, i32
  }
  func.func @transform_1(%arg0: i32, %arg1: i32, %arg2: i32) -> (i32, i32) {
    %c0_i32 = arith.constant 0 : i32
    return %arg2, %arg1 : i32, i32
  }
  func.func @transform_2(%arg0: i32, %arg1: i32, %arg2: i32) -> (i32, i32) {
    %c0_i32 = arith.constant 0 : i32
    %c0_i32_0 = arith.constant 0 : i32
    return %c0_i32, %arg1 : i32, i32
  }
  func.func @transform_3(%arg0: i32, %arg1: i32, %arg2: i32) -> (i32, i32) {
    %c0_i32 = arith.constant 0 : i32
    %c0_i32_0 = arith.constant 0 : i32
    return %c0_i32, %arg1 : i32, i32
  }
  func.func @transform_4(%arg0: i32, %arg1: i32, %arg2: i32) -> (i32, i32) {
    %c0_i32 = arith.constant 0 : i32
    return %arg0, %arg1 : i32, i32
  }
}

module attributes {stable_mosaic.version = 11 : i64} {
  func.func @_matmul_kernel(%arg0: i32, %arg1: i32, %arg2: i32, %arg3: memref<72x128xbf16, #tpu.memory_space<vmem>>, %arg4: memref<128x128xbf16, #tpu.memory_space<vmem>>, %arg5: memref<1x128xf32, #tpu.memory_space<vmem>>, %arg6: memref<1x128xf32, #tpu.memory_space<vmem>>, %arg7: memref<72x128xf32, #tpu.memory_space<vmem>>, %arg8: memref<72x128xf32, #tpu.memory_space<vmem>>) attributes {dimension_semantics = [#tpu.dimension_semantics<parallel>, #tpu.dimension_semantics<parallel>, #tpu.dimension_semantics<arbitrary>], iteration_bounds = array<i64: 1, 1, 1>, scalar_prefetch = 0 : i64, scratch_operands = 1 : i64, tpu.core_type = #tpu.core_type<tc>, window_params = [{transform_indices = @transform_0, window_bounds = array<i64: 72, 128>}, {transform_indices = @transform_1, window_bounds = array<i64: 128, 128>}, {transform_indices = @transform_2, window_bounds = array<i64: 1, 128>}, {transform_indices = @transform_3, window_bounds = array<i64: 1, 128>}, {transform_indices = @transform_4, window_bounds = array<i64: 72, 128>}]} {
    %c0_i32 = arith.constant 0 : i32
    %0 = arith.cmpi eq, %arg2, %c0_i32 : i32
    %1 = arith.extui %0 : i1 to i32
    %c0_i32_0 = arith.constant 0 : i32
    %2 = arith.cmpi ne, %1, %c0_i32_0 : i32
    scf.if %2 {
      %cst_10 = arith.constant 0.000000e+00 : f32
      %12 = vector.broadcast %cst_10 : f32 to vector<72x128xf32>
      %c0_11 = arith.constant 0 : index
      %c0_12 = arith.constant 0 : index
      %13 = vector.load %arg8[%c0_11, %c0_12] : memref<72x128xf32, #tpu.memory_space<vmem>>, vector<72x128xf32>
      tpu.vector_store %arg8[%c0_11, %c0_12], %12 {strides = array<i32>} : memref<72x128xf32, #tpu.memory_space<vmem>>, vector<72x128xf32>,
    } else {
    }
    %c0 = arith.constant 0 : index
    %c0_1 = arith.constant 0 : index
    %3 = vector.load %arg8[%c0, %c0_1] : memref<72x128xf32, #tpu.memory_space<vmem>>, vector<72x128xf32>
    %c0_2 = arith.constant 0 : index
    %c0_3 = arith.constant 0 : index
    %4 = vector.load %arg3[%c0_2, %c0_3] : memref<72x128xbf16, #tpu.memory_space<vmem>>, vector<72x128xbf16>
    %c0_4 = arith.constant 0 : index
    %c0_5 = arith.constant 0 : index
    %5 = vector.load %arg4[%c0_4, %c0_5] : memref<128x128xbf16, #tpu.memory_space<vmem>>, vector<128x128xbf16>
    %cst = arith.constant dense<0.000000e+00> : vector<72x128xf32>
    %6 = tpu.matmul %4, %5, %cst {dimension_numbers = #tpu.dot_dimension_numbers<[1], [0], [0], [1], [0, 0, 1, 1], [], []>} : vector<72x128xbf16>, vector<128x128xbf16>, vector<72x128xf32> -> vector<72x128xf32>
    %7 = arith.addf %3, %6 : vector<72x128xf32>
    %c0_6 = arith.constant 0 : index
    %c0_7 = arith.constant 0 : index
    %8 = vector.load %arg8[%c0_6, %c0_7] : memref<72x128xf32, #tpu.memory_space<vmem>>, vector<72x128xf32>
    tpu.vector_store %arg8[%c0_6, %c0_7], %7 {strides = array<i32>} : memref<72x128xf32, #tpu.memory_space<vmem>>, vector<72x128xf32>,
    %c0_i32_8 = arith.constant 0 : i32
    %9 = arith.cmpi eq, %arg2, %c0_i32_8 : i32
    %10 = arith.extui %9 : i1 to i32
    %c0_i32_9 = arith.constant 0 : i32
    %11 = arith.cmpi ne, %10, %c0_i32_9 : i32
    scf.if %11 {
      %c0_10 = arith.constant 0 : index
      %c0_11 = arith.constant 0 : index
      %12 = vector.load %arg8[%c0_10, %c0_11] : memref<72x128xf32, #tpu.memory_space<vmem>>, vector<72x128xf32>
      %c0_12 = arith.constant 0 : index
      %c0_13 = arith.constant 0 : index
      %13 = vector.load %arg5[%c0_12, %c0_13] : memref<1x128xf32, #tpu.memory_space<vmem>>, vector<1x128xf32>
      %14 = vector.broadcast %13 : vector<1x128xf32> to vector<72x128xf32>
      %15 = arith.mulf %12, %14 : vector<72x128xf32>
      %c0_14 = arith.constant 0 : index
      %c0_15 = arith.constant 0 : index
      %16 = vector.load %arg6[%c0_14, %c0_15] : memref<1x128xf32, #tpu.memory_space<vmem>>, vector<1x128xf32>
      %17 = vector.broadcast %16 : vector<1x128xf32> to vector<72x128xf32>
      %18 = arith.addf %15, %17 : vector<72x128xf32>
      %c0_16 = arith.constant 0 : index
      %c0_17 = arith.constant 0 : index
      %19 = vector.load %arg7[%c0_16, %c0_17] : memref<72x128xf32, #tpu.memory_space<vmem>>, vector<72x128xf32>
      tpu.vector_store %arg7[%c0_16, %c0_17], %18 {strides = array<i32>} : memref<72x128xf32, #tpu.memory_space<vmem>>, vector<72x128xf32>,
    } else {
    }
    return
  }
  func.func @transform_0(%arg0: i32, %arg1: i32, %arg2: i32) -> (i32, i32) {
    %c0_i32 = arith.constant 0 : i32
    return %arg0, %arg2 : i32, i32
  }
  func.func @transform_1(%arg0: i32, %arg1: i32, %arg2: i32) -> (i32, i32) {
    %c0_i32 = arith.constant 0 : i32
    return %arg2, %arg1 : i32, i32
  }
  func.func @transform_2(%arg0: i32, %arg1: i32, %arg2: i32) -> (i32, i32) {
    %c0_i32 = arith.constant 0 : i32
    %c0_i32_0 = arith.constant 0 : i32
    return %c0_i32, %arg1 : i32, i32
  }
  func.func @transform_3(%arg0: i32, %arg1: i32, %arg2: i32) -> (i32, i32) {
    %c0_i32 = arith.constant 0 : i32
    %c0_i32_0 = arith.constant 0 : i32
    return %c0_i32, %arg1 : i32, i32
  }
  func.func @transform_4(%arg0: i32, %arg1: i32, %arg2: i32) -> (i32, i32) {
    %c0_i32 = arith.constant 0 : i32
    return %arg0, %arg1 : i32, i32
  }
}

module attributes {stable_mosaic.version = 11 : i64} {
  func.func @_bilinear_kernel(%arg0: i32, %arg1: memref<1x6x6xf32, #tpu.memory_space<vmem>>, %arg2: memref<16x6xf32, #tpu.memory_space<vmem>>, %arg3: memref<6x16xf32, #tpu.memory_space<vmem>>, %arg4: memref<1x16x16xf32, #tpu.memory_space<vmem>>) attributes {dimension_semantics = [#tpu.dimension_semantics<parallel>], iteration_bounds = array<i64: 6>, scalar_prefetch = 0 : i64, scratch_operands = 0 : i64, tpu.core_type = #tpu.core_type<tc>, window_params = [{transform_indices = @transform_0, window_bounds = array<i64: 1, 6, 6>}, {pipeline_mode = #tpu.pipeline_mode<synchronous>, transform_indices = @transform_1, window_bounds = array<i64: 16, 6>}, {pipeline_mode = #tpu.pipeline_mode<synchronous>, transform_indices = @transform_2, window_bounds = array<i64: 6, 16>}, {transform_indices = @transform_3, window_bounds = array<i64: 1, 16, 16>}]} {
    %c0 = arith.constant 0 : index
    %c0_0 = arith.constant 0 : index
    %0 = vector.load %arg2[%c0, %c0_0] : memref<16x6xf32, #tpu.memory_space<vmem>>, vector<16x6xf32>
    %c0_1 = arith.constant 0 : index
    %c0_2 = arith.constant 0 : index
    %c0_3 = arith.constant 0 : index
    %1 = vector.load %arg1[%c0_1, %c0_2, %c0_3] : memref<1x6x6xf32, #tpu.memory_space<vmem>>, vector<1x6x6xf32>
    %2 = vector.shape_cast %1 : vector<1x6x6xf32> to vector<6x6xf32>
    %cst = arith.constant dense<0.000000e+00> : vector<16x6xf32>
    %3 = tpu.matmul %0, %2, %cst {dimension_numbers = #tpu.dot_dimension_numbers<[1], [0], [0], [1], [0, 0, 1, 1], [], []>} : vector<16x6xf32>, vector<6x6xf32>, vector<16x6xf32> -> vector<16x6xf32>
    %c0_4 = arith.constant 0 : index
    %c0_5 = arith.constant 0 : index
    %4 = vector.load %arg3[%c0_4, %c0_5] : memref<6x16xf32, #tpu.memory_space<vmem>>, vector<6x16xf32>
    %cst_6 = arith.constant dense<0.000000e+00> : vector<16x16xf32>
    %5 = tpu.matmul %3, %4, %cst_6 {dimension_numbers = #tpu.dot_dimension_numbers<[1], [0], [0], [1], [0, 0, 1, 1], [], []>} : vector<16x6xf32>, vector<6x16xf32>, vector<16x16xf32> -> vector<16x16xf32>
    %c0_7 = arith.constant 0 : index
    %c0_8 = arith.constant 0 : index
    %c0_9 = arith.constant 0 : index
    %6 = vector.load %arg4[%c0_7, %c0_8, %c0_9] : memref<1x16x16xf32, #tpu.memory_space<vmem>>, vector<1x16x16xf32>
    %7 = vector.shape_cast %6 : vector<1x16x16xf32> to vector<16x16xf32>
    %8 = vector.shape_cast %5 : vector<16x16xf32> to vector<1x16x16xf32>
    tpu.vector_store %arg4[%c0_7, %c0_8, %c0_9], %8 {strides = array<i32>} : memref<1x16x16xf32, #tpu.memory_space<vmem>>, vector<1x16x16xf32>,
    return
  }
  func.func @transform_0(%arg0: i32) -> (i32, i32, i32) {
    %c0_i32 = arith.constant 0 : i32
    %c0_i32_0 = arith.constant 0 : i32
    %c0_i32_1 = arith.constant 0 : i32
    return %arg0, %c0_i32, %c0_i32_0 : i32, i32, i32
  }
  func.func @transform_1(%arg0: i32) -> (i32, i32) {
    %c0_i32 = arith.constant 0 : i32
    %c0_i32_0 = arith.constant 0 : i32
    %c0_i32_1 = arith.constant 0 : i32
    return %c0_i32, %c0_i32_0 : i32, i32
  }
  func.func @transform_2(%arg0: i32) -> (i32, i32) {
    %c0_i32 = arith.constant 0 : i32
    %c0_i32_0 = arith.constant 0 : i32
    %c0_i32_1 = arith.constant 0 : i32
    return %c0_i32, %c0_i32_0 : i32, i32
  }
  func.func @transform_3(%arg0: i32) -> (i32, i32, i32) {
    %c0_i32 = arith.constant 0 : i32
    %c0_i32_0 = arith.constant 0 : i32
    %c0_i32_1 = arith.constant 0 : i32
    return %arg0, %c0_i32, %c0_i32_0 : i32, i32, i32
  }
}

</mosaic_0001>

<bundles_post_ra>
// kernel: torchvision_model_forward.8
= control target key start
LH: loop header
LB: loop body
LE: loop exit
PB: predicated region body
PF: predicated region fallthrough
CT: control target
= control target key end

     0   :  { %s916_s30 = smov 0   ;;  %s1027_s0 = inlined_call_operand.vmem [shape: bf16[2,4,4,16], index: 0, kind: input, shape index: {}]   ;;  %s1028_s1 = inlined_call_operand.vmem [shape: bf16[2,4,4,16], index: 1, kind: input, shape index: {}]   ;;  %s1029_s2 = inlined_call_operand.vmem [shape: bf16[2,4,4,16], index: 2, kind: input, shape index: {}]   ;;  %s1030_s3 = inlined_call_operand.vmem [shape: bf16[2,4,4,16], index: 3, kind: input, shape index: {}]   ;;  %s1031_s4 = inlined_call_operand.vmem [shape: bf16[2,4,4,16], index: 4, kind: input, shape index: {}]   ;;  %s1032_s5 = inlined_call_operand.vmem [shape: bf16[2,4,4,16], index: 5, kind: input, shape index: {}]   ;;  %s1033_s6 = inlined_call_operand.vmem [shape: bf16[2,4,4,16], index: 6, kind: input, shape index: {}]   ;;  %s1034_s7 = inlined_call_operand.vmem [shape: bf16[2,4,4,16], index: 7, kind: input, shape index: {}]   ;;  %s1035_s8 = inlined_call_operand.vmem [shape: bf16[2,4,4,16], index: 8, kind: input, shape index: {}]   ;;  %s1036_s9 = inlined_call_operand.vmem [shape: bf16[2,4,4,16], index: 9, kind: output, shape index: {}]  }
   0x1 LB: > { %s813_s10 = sadd.s32 4294967295, %s864_s30   ;;  %p817_p0 = scmp.ge.s32.totalorder %s864_s30, 1  ;;  %s864_s30 = sphi %s916_s30, %s19_s30  }
   0x2   : > { %p367_p1 = scmp.lt.s32.totalorder %s864_s30, 3 }
   0x4   : > { %p368_p2 = pnand %p817_p0, %p367_p1 }
   0x5   : > { %p443_p3 = scmp.lt.s32.totalorder (!%p368_p2), %s813_s10, 1 }
   0x6   : > { %371 = sbr.rel (%p368_p2) target bundleno = 42 (0x2a), region = 56 }
   0xb   : > { %s1038_s10 = smov (!%p443_p3, %s813_s10), 1  ;;  %vm657_vm0 = vcmask 123904  }
   0xc   : > { %s924_s11 = sshll.u32 %s1038_s10, 3 }
   0xd   : > { %s930_s14 = scalar_lea.vmem %s1027_s0, %s924_s11  ;;  %s936_s17 = scalar_lea.vmem %s1028_s1, %s924_s11 }
   0xe   : > { %s942_s20 = scalar_lea.vmem %s1029_s2, %s924_s11  ;;  %s948_s23 = scalar_lea.vmem %s1030_s3, %s924_s11  ;;  %v493_v0 = vld [vmem:[%s930_s14] sm:$0x3]  ;;  %v494_v2 = vld [vmem:[%s930_s14 + $0x2] sm:$0x3]  ;;  %v495_v29 = vld [vmem:[%s930_s14 + $0x4] sm:$0x3] }
   0xf   : > { %v497_v1 = vld [vmem:[%s936_s17] sm:$0x3]  ;;  %s957_s26 = scalar_lea.vmem %s1031_s4, %s924_s11  ;;  %s963_s29 = scalar_lea.vmem %s1032_s5, %s924_s11  ;;  %v501_v3 = vunpack.c.l.bf16 %v493_v0  ;;  %v498_v7 = vld [vmem:[%s936_s17 + $0x2] sm:$0x3]  ;;  %v502_v8 = vunpack.c.l.bf16 %v494_v2  ;;  %v499_v30 = vld [vmem:[%s936_s17 + $0x4] sm:$0x3]  ;;  %v503_v34 = vunpack.c.l.bf16 %v495_v29 }
  0x10   : > { %v505_v4 = vunpack.c.l.bf16 %v497_v1  ;;  %v517_v5 = vld [vmem:[%s942_s20] sm:$0x3]  ;;  %s972_s13 = scalar_lea.vmem %s1033_s6, %s924_s11  ;;  %s978_s18 = scalar_lea.vmem %s1034_s7, %s924_s11  ;;  %v506_v11 = vunpack.c.l.bf16 %v498_v7  ;;  %v518_v12 = vld [vmem:[%s942_s20 + $0x2] sm:$0x3]  ;;  %v519_v31 = vld [vmem:[%s942_s20 + $0x4] sm:$0x3]  ;;  %v507_v35 = vunpack.c.l.bf16 %v499_v30 }
  0x11   : > { %v537_v6 = vld [vmem:[%s948_s23] sm:$0x3]  ;;  %v525_v9 = vunpack.c.l.bf16 %v517_v5  ;;  %v526_v16 = vunpack.c.l.bf16 %v518_v12  ;;  %v538_v17 = vld [vmem:[%s948_s23 + $0x2] sm:$0x3]  ;;  %s995_s22 = scalar_lea.vmem %s1035_s8, %s924_s11  ;;  %v527_v36 = vunpack.c.l.bf16 %v519_v31  ;;  %v539_v37 = vld [vmem:[%s948_s23 + $0x4] sm:$0x3] }
  0x12   : > { %v557_v10 = vld [vmem:[%s957_s26] sm:$0x3]  ;;  %v509_v13 = vmax.f32 %v501_v3, %v505_v4  ;;  %v545_v14 = vunpack.c.l.bf16 %v537_v6  ;;  %v510_v18 = vmax.f32 %v502_v8, %v506_v11  ;;  %v546_v19 = vunpack.c.l.bf16 %v538_v17  ;;  %v558_v20 = vld [vmem:[%s957_s26 + $0x2] sm:$0x3]  ;;  %v559_v42 = vld [vmem:[%s957_s26 + $0x4] sm:$0x3] }
  0x13   : > { %v577_v15 = vld [vmem:[%s963_s29] sm:$0x3]  ;;  %v565_v22 = vunpack.c.l.bf16 %v557_v10  ;;  %v578_v25 = vld [vmem:[%s963_s29 + $0x2] sm:$0x3]  ;;  %v566_v28 = vunpack.c.l.bf16 %v558_v20  ;;  %v511_v45 = vmax.f32 %v503_v34, %v507_v35  ;;  %v547_v46 = vunpack.c.l.bf16 %v539_v37  ;;  %v496_v47 = vld [vmem:[%s930_s14 + $0x6] sm:$0x3] }
  0x14   : > { %v529_v21 = vmax.f32 %v509_v13, %v525_v9  ;;  %v597_v23 = vld [vmem:[%s972_s13] sm:$0x3]  ;;  %v585_v26 = vunpack.c.l.bf16 %v577_v15  ;;  %v530_v27 = vmax.f32 %v510_v18, %v526_v16  ;;  %v598_v33 = vld [vmem:[%s972_s13 + $0x2] sm:$0x3]  ;;  %v586_v40 = vunpack.c.l.bf16 %v578_v25  ;;  %v500_v48 = vld [vmem:[%s936_s17 + $0x6] sm:$0x3] }
  0x15   : > { %v617_v24 = vld [vmem:[%s978_s18] sm:$0x3]  ;;  %v605_v38 = vunpack.c.l.bf16 %v597_v23  ;;  %v618_v41 = vld [vmem:[%s978_s18 + $0x2] sm:$0x3]  ;;  %v520_v49 = vld [vmem:[%s942_s20 + $0x6] sm:$0x3]  ;;  %v606_v52 = vunpack.c.l.bf16 %v598_v33  ;;  %v504_v54 = vunpack.c.l.bf16 %v496_v47  ;;  %v508_v55 = vunpack.c.l.bf16 %v500_v48  ;;  %s492_s20 = scalar_lea.vmem %s1036_s9, %s924_s11 }
  0x16   : > { %v549_v32 = vmax.f32 %v529_v21, %v545_v14  ;;  %v550_v39 = vmax.f32 %v530_v27, %v546_v19  ;;  %v625_v44 = vunpack.c.l.bf16 %v617_v24  ;;  %v637_v50 = vld [vmem:[%s995_s22] sm:$0x3]  ;;  %v579_v53 = vld [vmem:[%s963_s29 + $0x4] sm:$0x3]  ;;  %v540_v56 = vld [vmem:[%s948_s23 + $0x6] sm:$0x3]  ;;  %v531_v59 = vmax.f32 %v511_v45, %v527_v36 }
  0x17   : > { %v638_v58 = vld [vmem:[%s995_s22 + $0x2] sm:$0x3]  ;;  %v567_v60 = vunpack.c.l.bf16 %v559_v42  ;;  %v528_v61 = vunpack.c.l.bf16 %v520_v49  ;;  %v560_v62 = vld [vmem:[%s957_s26 + $0x6] sm:$0x3]  ;;  %v626_v0 = vunpack.c.l.bf16 %v618_v41  ;;  %v599_v1 = vld [vmem:[%s972_s13 + $0x4] sm:$0x3]  ;;  %v512_v2 = vmax.f32 %v504_v54, %v508_v55 }
  0x18   : > { %v569_v43 = vmax.f32 %v549_v32, %v565_v22  ;;  %v570_v51 = vmax.f32 %v550_v39, %v566_v28  ;;  %v548_v3 = vunpack.c.l.bf16 %v540_v56  ;;  %v645_v5 = vunpack.c.l.bf16 %v637_v50  ;;  %v580_v8 = vld [vmem:[%s963_s29 + $0x6] sm:$0x3]  ;;  %v619_v11 = vld [vmem:[%s978_s18 + $0x4] sm:$0x3] }
  0x19   : > { %v551_v6 = vmax.f32 %v531_v59, %v547_v46  ;;  %v587_v7 = vunpack.c.l.bf16 %v579_v53  ;;  %v646_v10 = vunpack.c.l.bf16 %v638_v58  ;;  %v532_v12 = vmax.f32 %v512_v2, %v528_v61  ;;  %v600_v17 = vld [vmem:[%s972_s13 + $0x6] sm:$0x3]  ;;  %v639_v19 = vld [vmem:[%s995_s22 + $0x4] sm:$0x3] }
  0x1a   : > { %v589_v57 = vmax.f32 %v569_v43, %v585_v26  ;;  %v590_v63 = vmax.f32 %v570_v51, %v586_v40  ;;  %v568_v13 = vunpack.c.l.bf16 %v560_v62  ;;  %v607_v16 = vunpack.c.l.bf16 %v599_v1  ;;  %v620_v25 = vld [vmem:[%s978_s18 + $0x6] sm:$0x3] }
  0x1b   : > { %v571_v15 = vmax.f32 %v551_v6, %v567_v60  ;;  %v552_v20 = vmax.f32 %v532_v12, %v548_v3  ;;  %v588_v21 = vunpack.c.l.bf16 %v580_v8  ;;  %v627_v24 = vunpack.c.l.bf16 %v619_v11  ;;  %v640_v32 = vld [vmem:[%s995_s22 + $0x6] sm:$0x3] }
  0x1c   : > { %v609_v4 = vmax.f32 %v589_v57, %v605_v38  ;;  %v610_v9 = vmax.f32 %v590_v63, %v606_v52  ;;  %v608_v28 = vunpack.c.l.bf16 %v600_v17  ;;  %v647_v31 = vunpack.c.l.bf16 %v639_v19 }
  0x1d   : > { %v591_v23 = vmax.f32 %v571_v15, %v587_v7  ;;  %v572_v27 = vmax.f32 %v552_v20, %v568_v13  ;;  %v628_v35 = vunpack.c.l.bf16 %v620_v25  ;;  %v648_v38 = vunpack.c.l.bf16 %v640_v32 }
  0x1e   : > { %v629_v14 = vmax.f32 %v609_v4, %v625_v44  ;;  %v630_v18 = vmax.f32 %v610_v9, %v626_v0 }
  0x1f   : > { %v611_v30 = vmax.f32 %v591_v23, %v607_v16  ;;  %v592_v34 = vmax.f32 %v572_v27, %v588_v21 }
  0x20   : > { %v649_v22 = vmax.f32 %v629_v14, %v645_v5  ;;  %v650_v26 = vmax.f32 %v630_v18, %v646_v10 }
  0x21   : > { %v631_v36 = vmax.f32 %v611_v30, %v627_v24  ;;  %v612_v37 = vmax.f32 %v592_v34, %v608_v28 }
  0x22   : > { %v653_v29 = vpack.c.bf16 %v649_v22, %v649_v22  ;;  %v654_v33 = vpack.c.bf16 %v650_v26, %v650_v26 }
  0x23   : > { %v651_v39 = vmax.f32 %v631_v36, %v647_v31  ;;  %v632_v40 = vmax.f32 %v612_v37, %v628_v35 }
  0x24   : > { %658 = vst.msk [vmem:[%s492_s20] sm:$0x3] %vm657_vm0, %v653_v29 }
  0x25   : > { %659 = vst.msk [vmem:[%s492_s20 + $0x2] sm:$0x3] %vm657_vm0, %v654_v33  ;;  %v655_v41 = vpack.c.bf16 %v651_v39, %v651_v39  ;;  %v652_v42 = vmax.f32 %v632_v40, %v648_v38 }
  0x27   : > { %660 = vst.msk [vmem:[%s492_s20 + $0x4] sm:$0x3] %vm657_vm0, %v655_v41  ;;  %v656_v43 = vpack.c.bf16 %v652_v42, %v652_v42 }
  0x29   : > { %661 = vst.msk [vmem:[%s492_s20 + $0x6] sm:$0x3] %vm657_vm0, %v656_v43 }
  0x2a PF: > { %s19_s30 = sadd.s32 1, %s864_s30  }
  0x2b   : > { %p16_p4 = scmp.ge.s32.totalorder %s19_s30, 4  }
  0x2d   :  { %18 = sbr.rel (!%p16_p4) target bundleno = 1 (0x1), region = 110 }

// kernel: torchvision_model_forward.7
= control target key start
LH: loop header
LB: loop body
LE: loop exit
PB: predicated region body
PF: predicated region fallthrough
CT: control target
= control target key end

     0   :  { %s864_s1 = inlined_call_operand.vmem [shape: bf16[256,128], index: 1, kind: input, shape index: {}]   ;;  %s865_s0 = inlined_call_operand.vmem [shape: bf16[104,256], index: 0, kind: input, shape index: {}]   ;;  %s866_s2 = inlined_call_operand.vmem [shape: f32[1,128], index: 2, kind: input, shape index: {}]   ;;  %s867_s3 = inlined_call_operand.vmem [shape: f32[1,128], index: 3, kind: input, shape index: {}]   ;;  %s868_s4 = inlined_call_operand.vmem [shape: bf16[104,128], index: 4, kind: output, shape index: {}]  }
   0x1   :  { %v591_v0 = vld [vmem:[%s864_s1 + $0x38] sm:$0xff]  ;;  %v590_v2 = vld [vmem:[%s864_s1 + $0x30] sm:$0xff]  ;;  %v589_v4 = vld [vmem:[%s864_s1 + $0x28] sm:$0xff] }
   0x2   :  { %v599_v1 = vld [vmem:[%s864_s1 + $0x78] sm:$0xff]  ;;  %255 = vmatpush.bf16.msra.mxu0 %v591_v0  ;;  %635 = vmatpush.bf16.msra.mxu2 %v591_v0  ;;  %v598_v3 = vld [vmem:[%s864_s1 + $0x70] sm:$0xff]  ;;  %v597_v5 = vld [vmem:[%s864_s1 + $0x68] sm:$0xff] }
   0x3   :  { %298 = vmatpush.bf16.msra.mxu1 %v599_v1  ;;  %643 = vmatpush.bf16.msra.mxu3 %v599_v1  ;;  %v588_v6 = vld [vmem:[%s864_s1 + $0x20] sm:$0xff]  ;;  %v587_v8 = vld [vmem:[%s864_s1 + $0x18] sm:$0xff]  ;;  %v586_v10 = vld [vmem:[%s864_s1 + $0x10] sm:$0xff] }
   0x4   :  { %v596_v7 = vld [vmem:[%s864_s1 + $0x60] sm:$0xff]  ;;  %v595_v9 = vld [vmem:[%s864_s1 + $0x58] sm:$0xff]  ;;  %v594_v11 = vld [vmem:[%s864_s1 + $0x50] sm:$0xff] }
   0x5   :  { %v585_v12 = vld [vmem:[%s864_s1 + $0x8] sm:$0xff]  ;;  %v584_v14 = vld [vmem:[%s864_s1] sm:$0xff]  ;;  %v486_v18 = vld [vmem:[%s865_s0 + $0x30] sm:$0xf] }
   0x6   :  { %256 = vmatpush.bf16.msra.mxu0 %v590_v2  ;;  %636 = vmatpush.bf16.msra.mxu2 %v590_v2  ;;  %v593_v13 = vld [vmem:[%s864_s1 + $0x48] sm:$0xff]  ;;  %v592_v15 = vld [vmem:[%s864_s1 + $0x40] sm:$0xff]  ;;  %v579_v19 = vld [vmem:[%s865_s0 + $0x34] sm:$0xf0] }
   0x7   :  { %299 = vmatpush.bf16.msra.mxu1 %v598_v3  ;;  %644 = vmatpush.bf16.msra.mxu3 %v598_v3  ;;  %v462_v16 = vld [vmem:[%s865_s0] sm:$0xf]  ;;  %v573_v17 = vld [vmem:[%s865_s0 + $0x4] sm:$0xf0]  ;;  %v572_v20 = vld [vmem:[%s865_s0 + $0x4] sm:$0xf]  ;;  %v487_v25 = vor.u32 %v579_v19, %v486_v18 }
   0x8   :  { %v464_v21 = vld [vmem:[%s865_s0 + $0x8] sm:$0xf0]  ;;  %v580_v22 = vld [vmem:[%s865_s0 + $0x44] sm:$0xf]  ;;  %v463_v24 = vor.u32 %v573_v17, %v462_v16  ;;  %v470_v28 = vld [vmem:[%s865_s0 + $0x10] sm:$0xf] }
   0x9   :  { %v496_v23 = vld [vmem:[%s865_s0 + $0x48] sm:$0xf0]  ;;  %v467_v26 = vor.u32 %v572_v20, %v464_v21  ;;  %v575_v29 = vld [vmem:[%s865_s0 + $0x14] sm:$0xf0]  ;;  %v494_v30 = vld [vmem:[%s865_s0 + $0x40] sm:$0xf] }
   0xa   :  { %257 = vmatpush.bf16.msra.mxu0 %v589_v4  ;;  %637 = vmatpush.bf16.msra.mxu2 %v589_v4  ;;  %v499_v27 = vor.u32 %v580_v22, %v496_v23  ;;  %v581_v31 = vld [vmem:[%s865_s0 + $0x44] sm:$0xf0]  ;;  %v574_v32 = vld [vmem:[%s865_s0 + $0x14] sm:$0xf]  ;;  %v472_v33 = vld [vmem:[%s865_s0 + $0x18] sm:$0xf0]  ;;  %v471_v36 = vor.u32 %v575_v29, %v470_v28 }
   0xb   :  { %300 = vmatpush.bf16.msra.mxu1 %v597_v5  ;;  %645 = vmatpush.bf16.msra.mxu3 %v597_v5  ;;  %v582_v34 = vld [vmem:[%s865_s0 + $0x54] sm:$0xf]  ;;  %v504_v35 = vld [vmem:[%s865_s0 + $0x58] sm:$0xf0]  ;;  %v495_v37 = vor.u32 %v581_v31, %v494_v30  ;;  %v475_v38 = vor.u32 %v574_v32, %v472_v33  ;;  %v59_v40 = vld [vmem:[%s865_s0 + $0x60] sm:$0xff] }
   0xc   :  { %v507_v39 = vor.u32 %v582_v34, %v504_v35  ;;  %v478_v41 = vld [vmem:[%s865_s0 + $0x20] sm:$0xf]  ;;  %v577_v42 = vld [vmem:[%s865_s0 + $0x24] sm:$0xf0]  ;;  %v502_v43 = vld [vmem:[%s865_s0 + $0x50] sm:$0xf]  ;;  %v130_v45 = vunpack.c.h.b16 %v59_v40  ;;  %v129_v52 = vunpack.c.l.b16 %v59_v40 }
   0xd   :  { %v583_v44 = vld [vmem:[%s865_s0 + $0x54] sm:$0xf0]  ;;  %v576_v46 = vld [vmem:[%s865_s0 + $0x24] sm:$0xf]  ;;  %v480_v47 = vld [vmem:[%s865_s0 + $0x28] sm:$0xf0]  ;;  %v479_v48 = vor.u32 %v577_v42, %v478_v41 }
   0xe   :  { %258 = vmatpush.bf16.msra.mxu0 %v588_v6  ;;  %638 = vmatpush.bf16.msra.mxu2 %v588_v6  ;;  %v503_v49 = vor.u32 %v583_v44, %v502_v43  ;;  %v483_v50 = vor.u32 %v576_v46, %v480_v47  ;;  %v144_v51 = vpack.c.b16 %v130_v45, %v130_v45  ;;  %v578_v53 = vld [vmem:[%s865_s0 + $0x34] sm:$0xf]  ;;  %v488_v54 = vld [vmem:[%s865_s0 + $0x38] sm:$0xf0]  ;;  %v804_v60 = vld [vmem:[%s866_s2] ss:$0 sm:$0xff] }
   0xf   :  { %301 = vmatpush.bf16.msra.mxu1 %v596_v7  ;;  %646 = vmatpush.bf16.msra.mxu3 %v596_v7  ;;  %v143_v55 = vpack.c.b16 %v129_v52, %v129_v52  ;;  %v491_v56 = vor.u32 %v578_v53, %v488_v54  ;;  %v812_v0 = vld [vmem:[%s867_s3] ss:$0 sm:$0xff] }
  0x12   :  { %259 = vmatpush.bf16.msra.mxu0 %v587_v8  ;;  %639 = vmatpush.bf16.msra.mxu2 %v587_v8 }
  0x13   :  { %302 = vmatpush.bf16.msra.mxu1 %v595_v9  ;;  %647 = vmatpush.bf16.msra.mxu3 %v595_v9 }
  0x16   :  { %260 = vmatpush.bf16.msra.mxu0 %v586_v10  ;;  %640 = vmatpush.bf16.msra.mxu2 %v586_v10 }
  0x17   :  { %303 = vmatpush.bf16.msra.mxu1 %v594_v11  ;;  %648 = vmatpush.bf16.msra.mxu3 %v594_v11 }
  0x1a   :  { %261 = vmatpush.bf16.msra.mxu0 %v585_v12  ;;  %641 = vmatpush.bf16.msra.mxu2 %v585_v12 }
  0x1b   :  { %304 = vmatpush.bf16.msra.mxu1 %v593_v13  ;;  %649 = vmatpush.bf16.msra.mxu3 %v593_v13 }
  0x1e   :  { %262 = vmatpush.bf16.msra.mxu0 %v584_v14  ;;  %642 = vmatpush.bf16.msra.mxu2 %v584_v14 }
  0x1f   :  { %305 = vmatpush.bf16.msra.mxu1 %v592_v15  ;;  %650 = vmatpush.bf16.msra.mxu3 %v592_v15 }
  0x21   :  { %263 = vmatmul.bf16.vlgmr.msra.gmra.mxu0 %v463_v24  ;;  %278 = vmatmul.bf16.vlgmr.msra.gmra.mxu2 %v487_v25 }
  0x22   :  { %306 = vmatmul.bf16.vlgmr.msra.gmra.mxu1 %v467_v26  ;;  %326 = vmatmul.bf16.vlgmr.msra.gmra.mxu3 %v499_v27 }
  0x31   :  { %268 = vmatmul.bf16.gmra.mxu0 %v471_v36  ;;  %283 = vmatmul.bf16.gmra.mxu2 %v495_v37 }
  0x32   :  { %311 = vmatmul.bf16.gmra.mxu1 %v475_v38  ;;  %331 = vmatmul.bf16.gmra.mxu3 %v507_v39 }
  0x41   :  { %273 = vmatmul.bf16.gmra.mxu0 %v479_v48  ;;  %288 = vmatmul.bf16.gmra.mxu2 %v503_v49 }
  0x42   :  { %316 = vmatmul.bf16.gmra.mxu1 %v483_v50  ;;  %336 = vmatmul.bf16.gmra.mxu3 %v144_v51 }
  0x51   :  { %293 = vmatmul.bf16.gmra.mxu2 %v143_v55 }
  0x52   :  { %321 = vmatmul.bf16.gmra.mxu1 %v491_v56 }
  0x9e   :  { %v264_v57 = vpop.f32.mrf.mxu0 }
  0x9f   :  { %v307_v58 = vpop.f32.mrf.mxu1 }
  0xa0   :  { %v308_v59 = vadd.f32 %v307_v58, %v264_v57 }
  0xa2   :  { %v387_v63 = vmul.f32 %v804_v60, %v308_v59 }
  0xa4   :  { %v806_v61 = vpop.f32.mrf.mxu2  ;;  %v404_v4 = vadd.f32 %v812_v0, %v387_v63 }
  0xa5   :  { %v327_v62 = vpop.f32.mrf.mxu3 }
  0xa6   :  { %v266_v1 = vpop.f32.mrf.mxu0  ;;  %v417_v9 = vmax.f32 %v404_v4, 0.0 }
  0xa7   :  { %v309_v2 = vpop.f32.mrf.mxu1 }
  0xa8   :  { %v310_v3 = vadd.f32 %v309_v2, %v266_v1 }
  0xaa   :  { %v388_v5 = vmul.f32 %v804_v60, %v310_v3 }
  0xac   :  { %v405_v6 = vadd.f32 %v812_v0, %v388_v5  ;;  %v817_v7 = vpop.f32.mrf.mxu2 }
  0xad   :  { %v329_v8 = vpop.f32.mrf.mxu3 }
  0xae   :  { %v418_v10 = vmax.f32 %v405_v6, 0.0  ;;  %v269_v11 = vpop.f32.mrf.mxu0 }
  0xaf   :  { %v312_v12 = vpop.f32.mrf.mxu1 }
  0xb0   :  { %v603_v13 = vpack.c.bf16 %v418_v10, %v417_v9  ;;  %v313_v14 = vadd.f32 %v312_v12, %v269_v11 }
  0xb2   :  { %604 = vst [vmem:[%s868_s4] sm:$0xff] %v603_v13   ;;  %v389_v17 = vmul.f32 %v804_v60, %v313_v14 }
  0xb4   :  { %v284_v15 = vpop.f32.mrf.mxu2  ;;  %v406_v22 = vadd.f32 %v812_v0, %v389_v17 }
  0xb5   :  { %v332_v16 = vpop.f32.mrf.mxu3  ;;  %v328_v19 = vadd.f32 %v327_v62, %v284_v15 }
  0xb6   :  { %v271_v18 = vpop.f32.mrf.mxu0  ;;  %v419_v29 = vmax.f32 %v406_v22, 0.0 }
  0xb7   :  { %v314_v20 = vpop.f32.mrf.mxu1  ;;  %v395_v24 = vmul.f32 %v804_v60, %v328_v19 }
  0xb8   :  { %v315_v21 = vadd.f32 %v314_v20, %v271_v18 }
  0xb9   :  { %v412_v32 = vadd.f32 %v812_v0, %v395_v24 }
  0xba   :  { %v390_v23 = vmul.f32 %v804_v60, %v315_v21 }
  0xbb   :  { %v425_v38 = vmax.f32 %v412_v32, 0.0 }
  0xbc   :  { %v407_v25 = vadd.f32 %v812_v0, %v390_v23  ;;  %v286_v26 = vpop.f32.mrf.mxu2 }
  0xbd   :  { %v330_v27 = vadd.f32 %v329_v8, %v286_v26  ;;  %v334_v28 = vpop.f32.mrf.mxu3 }
  0xbe   :  { %v420_v30 = vmax.f32 %v407_v25, 0.0  ;;  %v274_v31 = vpop.f32.mrf.mxu0 }
  0xbf   :  { %v396_v33 = vmul.f32 %v804_v60, %v330_v27  ;;  %v317_v34 = vpop.f32.mrf.mxu1 }
  0xc0   :  { %v608_v35 = vpack.c.bf16 %v420_v30, %v419_v29  ;;  %v318_v37 = vadd.f32 %v317_v34, %v274_v31 }
  0xc1   :  { %v413_v36 = vadd.f32 %v812_v0, %v396_v33 }
  0xc2   :  { %630 = vst [vmem:[%s868_s4 + $0x8] sm:$0xff] %v608_v35   ;;  %v391_v43 = vmul.f32 %v804_v60, %v318_v37 }
  0xc3   :  { %v426_v39 = vmax.f32 %v413_v36, 0.0 }
  0xc4   :  { %v289_v40 = vpop.f32.mrf.mxu2  ;;  %v408_v48 = vadd.f32 %v812_v0, %v391_v43 }
  0xc5   :  { %v623_v41 = vpack.c.bf16 %v426_v39, %v425_v38  ;;  %v337_v42 = vpop.f32.mrf.mxu3  ;;  %v333_v45 = vadd.f32 %v332_v16, %v289_v40 }
  0xc6   :  { %v276_v44 = vpop.f32.mrf.mxu0  ;;  %v421_v55 = vmax.f32 %v408_v48, 0.0 }
  0xc7   :  { %633 = vst [vmem:[%s868_s4 + $0x20] sm:$0xff] %v623_v41   ;;  %v319_v46 = vpop.f32.mrf.mxu1  ;;  %v397_v50 = vmul.f32 %v804_v60, %v333_v45 }
  0xc8   :  { %v320_v47 = vadd.f32 %v319_v46, %v276_v44 }
  0xc9   :  { %v414_v57 = vadd.f32 %v812_v0, %v397_v50 }
  0xca   :  { %v392_v49 = vmul.f32 %v804_v60, %v320_v47 }
  0xcb   :  { %v427_v2 = vmax.f32 %v414_v57, 0.0 }
  0xcc   :  { %v409_v51 = vadd.f32 %v812_v0, %v392_v49  ;;  %v291_v52 = vpop.f32.mrf.mxu2 }
  0xcd   :  { %v335_v53 = vadd.f32 %v334_v28, %v291_v52  ;;  %v339_v54 = vpop.f32.mrf.mxu3 }
  0xce   :  { %v422_v56 = vmax.f32 %v409_v51, 0.0 }
  0xcf   :  { %v398_v58 = vmul.f32 %v804_v60, %v335_v53  ;;  %v322_v59 = vpop.f32.mrf.mxu1 }
  0xd0   :  { %v613_v62 = vpack.c.bf16 %v422_v56, %v421_v55  ;;  %v323_v1 = vadd.f32 %v322_v59, %v806_v61 }
  0xd1   :  { %v415_v63 = vadd.f32 %v812_v0, %v398_v58 }
  0xd2   :  { %631 = vst [vmem:[%s868_s4 + $0x10] sm:$0xff] %v613_v62   ;;  %v393_v8 = vmul.f32 %v804_v60, %v323_v1 }
  0xd3   :  { %v428_v3 = vmax.f32 %v415_v63, 0.0 }
  0xd4   :  { %v294_v4 = vpop.f32.mrf.mxu2  ;;  %v410_v61 = vadd.f32 %v812_v0, %v393_v8 }
  0xd5   :  { %v628_v5 = vpack.c.bf16 %v428_v3, %v427_v2  ;;  %v338_v6 = vadd.f32 %v337_v42, %v294_v4 }
  0xd6   :  { %v423_v18 = vmax.f32 %v410_v61, 0.0 }
  0xd7   :  { %634 = vst [vmem:[%s868_s4 + $0x28] sm:$0xff] %v628_v5   ;;  %v399_v9 = vmul.f32 %v804_v60, %v338_v6  ;;  %v324_v10 = vpop.f32.mrf.mxu1 }
  0xd8   :  { %v325_v11 = vadd.f32 %v324_v10, %v817_v7 }
  0xd9   :  { %v416_v12 = vadd.f32 %v812_v0, %v399_v9 }
  0xda   :  { %v394_v13 = vmul.f32 %v804_v60, %v325_v11 }
  0xdb   :  { %v429_v14 = vmax.f32 %v416_v12, 0.0 }
  0xdc   :  { %v411_v15 = vadd.f32 %v812_v0, %v394_v13  ;;  %v296_v16 = vpop.f32.mrf.mxu2 }
  0xdd   :  { %v442_v17 = vpack.c.bf16 %v429_v14, %v429_v14 }
  0xde   :  { %v424_v19 = vmax.f32 %v411_v15, 0.0 }
  0xdf   :  { %455 = vst [vmem:[%s868_s4 + $0x30] sm:$0xf] %v442_v17 }
  0xe0   :  { %v618_v20 = vpack.c.bf16 %v424_v19, %v423_v18 }
  0xe2   :  { %632 = vst [vmem:[%s868_s4 + $0x18] sm:$0xff] %v618_v20  }

// kernel: torchvision_model_forward.9
= control target key start
LH: loop header
LB: loop body
LE: loop exit
PB: predicated region body
PF: predicated region fallthrough
CT: control target
= control target key end

     0   :  { %s504_s1 = inlined_call_operand.vmem [shape: bf16[256,128], index: 1, kind: input, shape index: {}]   ;;  %s505_s0 = inlined_call_operand.vmem [shape: bf16[32,256], index: 0, kind: input, shape index: {}]   ;;  %s506_s2 = inlined_call_operand.vmem [shape: f32[1,128], index: 2, kind: input, shape index: {}]   ;;  %s507_s3 = inlined_call_operand.vmem [shape: f32[1,128], index: 3, kind: input, shape index: {}]   ;;  %s508_s4 = inlined_call_operand.vmem [shape: bf16[32,128], index: 4, kind: output, shape index: {}]  }
   0x1   :  { %v357_v0 = vld [vmem:[%s504_s1 + $0x38] sm:$0xff]  ;;  %v356_v2 = vld [vmem:[%s504_s1 + $0x30] sm:$0xff]  ;;  %v355_v4 = vld [vmem:[%s504_s1 + $0x28] sm:$0xff] }
   0x2   :  { %v365_v1 = vld [vmem:[%s504_s1 + $0x78] sm:$0xff]  ;;  %181 = vmatpush.bf16.msra.mxu0 %v357_v0  ;;  %377 = vmatpush.bf16.msra.mxu2 %v357_v0  ;;  %v364_v3 = vld [vmem:[%s504_s1 + $0x70] sm:$0xff]  ;;  %v363_v5 = vld [vmem:[%s504_s1 + $0x68] sm:$0xff] }
   0x3   :  { %200 = vmatpush.bf16.msra.mxu1 %v365_v1  ;;  %385 = vmatpush.bf16.msra.mxu3 %v365_v1  ;;  %v354_v6 = vld [vmem:[%s504_s1 + $0x20] sm:$0xff]  ;;  %v353_v8 = vld [vmem:[%s504_s1 + $0x18] sm:$0xff]  ;;  %v352_v10 = vld [vmem:[%s504_s1 + $0x10] sm:$0xff] }
   0x4   :  { %v362_v7 = vld [vmem:[%s504_s1 + $0x60] sm:$0xff]  ;;  %v361_v9 = vld [vmem:[%s504_s1 + $0x58] sm:$0xff]  ;;  %v360_v11 = vld [vmem:[%s504_s1 + $0x50] sm:$0xff] }
   0x5   :  { %v351_v12 = vld [vmem:[%s504_s1 + $0x8] sm:$0xff]  ;;  %v350_v14 = vld [vmem:[%s504_s1] sm:$0xff]  ;;  %v276_v18 = vld [vmem:[%s505_s0 + $0x10] sm:$0xf] }
   0x6   :  { %182 = vmatpush.bf16.msra.mxu0 %v356_v2  ;;  %378 = vmatpush.bf16.msra.mxu2 %v356_v2  ;;  %v359_v13 = vld [vmem:[%s504_s1 + $0x48] sm:$0xff]  ;;  %v358_v15 = vld [vmem:[%s504_s1 + $0x40] sm:$0xff]  ;;  %v349_v19 = vld [vmem:[%s505_s0 + $0x14] sm:$0xf0] }
   0x7   :  { %201 = vmatpush.bf16.msra.mxu1 %v364_v3  ;;  %386 = vmatpush.bf16.msra.mxu3 %v364_v3  ;;  %v268_v16 = vld [vmem:[%s505_s0] sm:$0xf]  ;;  %v347_v17 = vld [vmem:[%s505_s0 + $0x4] sm:$0xf0]  ;;  %v346_v20 = vld [vmem:[%s505_s0 + $0x4] sm:$0xf]  ;;  %v277_v25 = vor.u32 %v349_v19, %v276_v18 }
   0x8   :  { %v270_v21 = vld [vmem:[%s505_s0 + $0x8] sm:$0xf0]  ;;  %v348_v22 = vld [vmem:[%s505_s0 + $0x14] sm:$0xf]  ;;  %v278_v23 = vld [vmem:[%s505_s0 + $0x18] sm:$0xf0]  ;;  %v269_v24 = vor.u32 %v347_v17, %v268_v16 }
   0x9   :  { %v273_v26 = vor.u32 %v346_v20, %v270_v21  ;;  %v281_v27 = vor.u32 %v348_v22, %v278_v23  ;;  %v393_v31 = vld [vmem:[%s506_s2] ss:$0 sm:$0xff] }
   0xa   :  { %183 = vmatpush.bf16.msra.mxu0 %v355_v4  ;;  %379 = vmatpush.bf16.msra.mxu2 %v355_v4  ;;  %v394_v35 = vld [vmem:[%s507_s3] ss:$0 sm:$0xff] }
   0xb   :  { %202 = vmatpush.bf16.msra.mxu1 %v363_v5  ;;  %387 = vmatpush.bf16.msra.mxu3 %v363_v5 }
   0xe   :  { %184 = vmatpush.bf16.msra.mxu0 %v354_v6  ;;  %380 = vmatpush.bf16.msra.mxu2 %v354_v6 }
   0xf   :  { %203 = vmatpush.bf16.msra.mxu1 %v362_v7  ;;  %388 = vmatpush.bf16.msra.mxu3 %v362_v7 }
  0x12   :  { %185 = vmatpush.bf16.msra.mxu0 %v353_v8  ;;  %381 = vmatpush.bf16.msra.mxu2 %v353_v8 }
  0x13   :  { %204 = vmatpush.bf16.msra.mxu1 %v361_v9  ;;  %389 = vmatpush.bf16.msra.mxu3 %v361_v9 }
  0x16   :  { %186 = vmatpush.bf16.msra.mxu0 %v352_v10  ;;  %382 = vmatpush.bf16.msra.mxu2 %v352_v10 }
  0x17   :  { %205 = vmatpush.bf16.msra.mxu1 %v360_v11  ;;  %390 = vmatpush.bf16.msra.mxu3 %v360_v11 }
  0x1a   :  { %187 = vmatpush.bf16.msra.mxu0 %v351_v12  ;;  %383 = vmatpush.bf16.msra.mxu2 %v351_v12 }
  0x1b   :  { %206 = vmatpush.bf16.msra.mxu1 %v359_v13  ;;  %391 = vmatpush.bf16.msra.mxu3 %v359_v13 }
  0x1e   :  { %188 = vmatpush.bf16.msra.mxu0 %v350_v14  ;;  %384 = vmatpush.bf16.msra.mxu2 %v350_v14 }
  0x1f   :  { %207 = vmatpush.bf16.msra.mxu1 %v358_v15  ;;  %392 = vmatpush.bf16.msra.mxu3 %v358_v15 }
  0x21   :  { %189 = vmatmul.bf16.vlgmr.msra.gmra.mxu0 %v269_v24  ;;  %194 = vmatmul.bf16.vlgmr.msra.gmra.mxu2 %v277_v25 }
  0x22   :  { %208 = vmatmul.bf16.vlgmr.msra.gmra.mxu1 %v273_v26  ;;  %213 = vmatmul.bf16.vlgmr.msra.gmra.mxu3 %v281_v27 }
  0x9e   :  { %v190_v28 = vpop.f32.mrf.mxu0 }
  0x9f   :  { %v209_v29 = vpop.f32.mrf.mxu1 }
  0xa0   :  { %v210_v30 = vadd.f32 %v209_v29, %v190_v28 }
  0xa2   :  { %v238_v34 = vmul.f32 %v393_v31, %v210_v30 }
  0xa4   :  { %v195_v32 = vpop.f32.mrf.mxu2  ;;  %v246_v40 = vadd.f32 %v394_v35, %v238_v34 }
  0xa5   :  { %v214_v33 = vpop.f32.mrf.mxu3 }
  0xa6   :  { %v192_v36 = vpop.f32.mrf.mxu0  ;;  %v215_v38 = vadd.f32 %v214_v33, %v195_v32  ;;  %v250_v46 = vmax.f32 %v246_v40, 0.0 }
  0xa7   :  { %v211_v37 = vpop.f32.mrf.mxu1 }
  0xa8   :  { %v212_v39 = vadd.f32 %v211_v37, %v192_v36  ;;  %v240_v42 = vmul.f32 %v393_v31, %v215_v38 }
  0xaa   :  { %v239_v41 = vmul.f32 %v393_v31, %v212_v39  ;;  %v248_v49 = vadd.f32 %v394_v35, %v240_v42 }
  0xac   :  { %v247_v43 = vadd.f32 %v394_v35, %v239_v41  ;;  %v197_v44 = vpop.f32.mrf.mxu2  ;;  %v252_v53 = vmax.f32 %v248_v49, 0.0 }
  0xad   :  { %v216_v45 = vpop.f32.mrf.mxu3 }
  0xae   :  { %v251_v47 = vmax.f32 %v247_v43, 0.0  ;;  %v217_v48 = vadd.f32 %v216_v45, %v197_v44 }
  0xb0   :  { %v369_v50 = vpack.c.bf16 %v251_v47, %v250_v46  ;;  %v241_v51 = vmul.f32 %v393_v31, %v217_v48 }
  0xb2   :  { %370 = vst [vmem:[%s508_s4] sm:$0xff] %v369_v50   ;;  %v249_v52 = vadd.f32 %v394_v35, %v241_v51 }
  0xb4   :  { %v253_v54 = vmax.f32 %v249_v52, 0.0 }
  0xb6   :  { %v374_v55 = vpack.c.bf16 %v253_v54, %v252_v53 }
  0xb8   :  { %376 = vst [vmem:[%s508_s4 + $0x8] sm:$0xff] %v374_v55  }

// kernel: torchvision_model_forward.10
= control target key start
LH: loop header
LB: loop body
LE: loop exit
PB: predicated region body
PF: predicated region fallthrough
CT: control target
= control target key end

     0   :  { %s681_s1 = inlined_call_operand.vmem [shape: bf16[384,128], index: 1, kind: input, shape index: {}]   ;;  %s682_s0 = inlined_call_operand.vmem [shape: bf16[32,384], index: 0, kind: input, shape index: {}]   ;;  %s683_s2 = inlined_call_operand.vmem [shape: f32[1,128], index: 2, kind: input, shape index: {}]   ;;  %s684_s3 = inlined_call_operand.vmem [shape: f32[1,128], index: 3, kind: input, shape index: {}]   ;;  %s685_s4 = inlined_call_operand.vmem [shape: bf16[32,128], index: 4, kind: output, shape index: {}]  }
   0x1   :  { %v498_v0 = vld [vmem:[%s681_s1 + $0x38] sm:$0xff]  ;;  %v497_v3 = vld [vmem:[%s681_s1 + $0x30] sm:$0xff]  ;;  %v496_v6 = vld [vmem:[%s681_s1 + $0x28] sm:$0xff] }
   0x2   :  { %v506_v1 = vld [vmem:[%s681_s1 + $0x78] sm:$0xff]  ;;  %261 = vmatpush.bf16.msra.mxu0 %v498_v0  ;;  %v505_v4 = vld [vmem:[%s681_s1 + $0x70] sm:$0xff]  ;;  %526 = vmatpush.bf16.msra.mxu3 %v498_v0  ;;  %v504_v7 = vld [vmem:[%s681_s1 + $0x68] sm:$0xff] }
   0x3   :  { %v514_v2 = vld [vmem:[%s681_s1 + $0xb8] sm:$0xff]  ;;  %280 = vmatpush.bf16.msra.mxu1 %v506_v1  ;;  %v513_v5 = vld [vmem:[%s681_s1 + $0xb0] sm:$0xff]  ;;  %v512_v8 = vld [vmem:[%s681_s1 + $0xa8] sm:$0xff] }
   0x4   :  { %299 = vmatpush.bf16.msra.mxu2 %v514_v2  ;;  %v495_v9 = vld [vmem:[%s681_s1 + $0x20] sm:$0xff]  ;;  %v494_v12 = vld [vmem:[%s681_s1 + $0x18] sm:$0xff]  ;;  %v493_v15 = vld [vmem:[%s681_s1 + $0x10] sm:$0xff] }
   0x5   :  { %v503_v10 = vld [vmem:[%s681_s1 + $0x60] sm:$0xff]  ;;  %v502_v13 = vld [vmem:[%s681_s1 + $0x58] sm:$0xff]  ;;  %v501_v16 = vld [vmem:[%s681_s1 + $0x50] sm:$0xff] }
   0x6   :  { %262 = vmatpush.bf16.msra.mxu0 %v497_v3  ;;  %527 = vmatpush.bf16.msra.mxu3 %v497_v3  ;;  %v511_v11 = vld [vmem:[%s681_s1 + $0xa0] sm:$0xff]  ;;  %v510_v14 = vld [vmem:[%s681_s1 + $0x98] sm:$0xff]  ;;  %v509_v17 = vld [vmem:[%s681_s1 + $0x90] sm:$0xff] }
   0x7   :  { %281 = vmatpush.bf16.msra.mxu1 %v505_v4  ;;  %v492_v18 = vld [vmem:[%s681_s1 + $0x8] sm:$0xff]  ;;  %v491_v21 = vld [vmem:[%s681_s1] sm:$0xff]  ;;  %v369_v27 = vld [vmem:[%s682_s0 + $0xc] sm:$0xf0] }
   0x8   :  { %300 = vmatpush.bf16.msra.mxu2 %v513_v5  ;;  %v500_v19 = vld [vmem:[%s681_s1 + $0x48] sm:$0xff]  ;;  %v499_v22 = vld [vmem:[%s681_s1 + $0x40] sm:$0xff]  ;;  %v487_v29 = vld [vmem:[%s682_s0 + $0x10] sm:$0xf0] }
   0x9   :  { %v508_v20 = vld [vmem:[%s681_s1 + $0x88] sm:$0xff]  ;;  %v507_v23 = vld [vmem:[%s681_s1 + $0x80] sm:$0xff]  ;;  %v379_v30 = vld [vmem:[%s682_s0 + $0x18] sm:$0xf] }
   0xa   :  { %263 = vmatpush.bf16.msra.mxu0 %v496_v6  ;;  %528 = vmatpush.bf16.msra.mxu3 %v496_v6  ;;  %v367_v24 = vld [vmem:[%s682_s0] sm:$0xf]  ;;  %v486_v25 = vld [vmem:[%s682_s0 + $0x8] sm:$0xf0]  ;;  %v485_v26 = vld [vmem:[%s682_s0 + $0x4] sm:$0xf] }
   0xb   :  { %282 = vmatpush.bf16.msra.mxu1 %v504_v7  ;;  %v375_v28 = vld [vmem:[%s682_s0 + $0x8] sm:$0xf]  ;;  %v489_v31 = vld [vmem:[%s682_s0 + $0x20] sm:$0xf0]  ;;  %v368_v32 = vor.u32 %v486_v25, %v367_v24  ;;  %v372_v33 = vor.u32 %v485_v26, %v369_v27  ;;  %v488_v36 = vld [vmem:[%s682_s0 + $0x1c] sm:$0xf] }
   0xc   :  { %301 = vmatpush.bf16.msra.mxu2 %v512_v8  ;;  %v376_v34 = vor.u32 %v487_v29, %v375_v28  ;;  %v380_v35 = vor.u32 %v489_v31, %v379_v30  ;;  %v381_v37 = vld [vmem:[%s682_s0 + $0x24] sm:$0xf0]  ;;  %v387_v38 = vld [vmem:[%s682_s0 + $0x20] sm:$0xf]  ;;  %v490_v39 = vld [vmem:[%s682_s0 + $0x28] sm:$0xf0] }
   0xd   :  { %v384_v40 = vor.u32 %v488_v36, %v381_v37  ;;  %v388_v41 = vor.u32 %v490_v39, %v387_v38  ;;  %v534_v48 = vld [vmem:[%s683_s2] ss:$0 sm:$0xff] }
   0xe   :  { %264 = vmatpush.bf16.msra.mxu0 %v495_v9  ;;  %529 = vmatpush.bf16.msra.mxu3 %v495_v9  ;;  %v535_v51 = vld [vmem:[%s684_s3] ss:$0 sm:$0xff] }
   0xf   :  { %283 = vmatpush.bf16.msra.mxu1 %v503_v10 }
  0x10   :  { %302 = vmatpush.bf16.msra.mxu2 %v511_v11 }
  0x12   :  { %265 = vmatpush.bf16.msra.mxu0 %v494_v12  ;;  %530 = vmatpush.bf16.msra.mxu3 %v494_v12 }
  0x13   :  { %284 = vmatpush.bf16.msra.mxu1 %v502_v13 }
  0x14   :  { %303 = vmatpush.bf16.msra.mxu2 %v510_v14 }
  0x16   :  { %266 = vmatpush.bf16.msra.mxu0 %v493_v15  ;;  %531 = vmatpush.bf16.msra.mxu3 %v493_v15 }
  0x17   :  { %285 = vmatpush.bf16.msra.mxu1 %v501_v16 }
  0x18   :  { %304 = vmatpush.bf16.msra.mxu2 %v509_v17 }
  0x1a   :  { %267 = vmatpush.bf16.msra.mxu0 %v492_v18  ;;  %532 = vmatpush.bf16.msra.mxu3 %v492_v18 }
  0x1b   :  { %286 = vmatpush.bf16.msra.mxu1 %v500_v19 }
  0x1c   :  { %305 = vmatpush.bf16.msra.mxu2 %v508_v20 }
  0x1e   :  { %268 = vmatpush.bf16.msra.mxu0 %v491_v21  ;;  %533 = vmatpush.bf16.msra.mxu3 %v491_v21 }
  0x1f   :  { %287 = vmatpush.bf16.msra.mxu1 %v499_v22 }
  0x20   :  { %306 = vmatpush.bf16.msra.mxu2 %v507_v23 }
  0x21   :  { %269 = vmatmul.bf16.vlgmr.msra.gmra.mxu0 %v368_v32  ;;  %274 = vmatmul.bf16.vlgmr.msra.gmra.mxu3 %v380_v35 }
  0x22   :  { %288 = vmatmul.bf16.vlgmr.msra.gmra.mxu1 %v372_v33 }
  0x23   :  { %307 = vmatmul.bf16.vlgmr.msra.gmra.mxu2 %v376_v34 }
  0x32   :  { %293 = vmatmul.bf16.gmra.mxu1 %v384_v40 }
  0x33   :  { %312 = vmatmul.bf16.gmra.mxu2 %v388_v41 }
  0x9e   :  { %v270_v43 = vpop.f32.mrf.mxu0 }
  0x9f   :  { %v289_v42 = vpop.f32.mrf.mxu1 }
  0xa0   :  { %v290_v44 = vadd.f32 %v289_v42, %v270_v43 }
  0xa4   :  { %v275_v58 = vpop.f32.mrf.mxu3 }
  0xa6   :  { %v308_v45 = vpop.f32.mrf.mxu2  ;;  %v272_v49 = vpop.f32.mrf.mxu0 }
  0xa7   :  { %v291_v46 = vpop.f32.mrf.mxu1  ;;  %v309_v47 = vadd.f32 %v308_v45, %v290_v44 }
  0xa8   :  { %v292_v52 = vadd.f32 %v291_v46, %v272_v49 }
  0xa9   :  { %v337_v50 = vmul.f32 %v534_v48, %v309_v47 }
  0xab   :  { %v345_v56 = vadd.f32 %v535_v51, %v337_v50 }
  0xac   :  { %v277_v3 = vpop.f32.mrf.mxu3 }
  0xad   :  { %v349_v60 = vmax.f32 %v345_v56, 0.0 }
  0xae   :  { %v310_v53 = vpop.f32.mrf.mxu2 }
  0xaf   :  { %v311_v54 = vadd.f32 %v310_v53, %v292_v52  ;;  %v294_v55 = vpop.f32.mrf.mxu1 }
  0xb0   :  { %v295_v62 = vadd.f32 %v294_v55, %v275_v58 }
  0xb1   :  { %v338_v57 = vmul.f32 %v534_v48, %v311_v54 }
  0xb3   :  { %v346_v59 = vadd.f32 %v535_v51, %v338_v57 }
  0xb5   :  { %v350_v61 = vmax.f32 %v346_v59, 0.0 }
  0xb6   :  { %v313_v63 = vpop.f32.mrf.mxu2 }
  0xb7   :  { %v518_v0 = vpack.c.bf16 %v350_v61, %v349_v60  ;;  %v314_v1 = vadd.f32 %v313_v63, %v295_v62  ;;  %v296_v2 = vpop.f32.mrf.mxu1 }
  0xb8   :  { %v297_v5 = vadd.f32 %v296_v2, %v277_v3 }
  0xb9   :  { %519 = vst [vmem:[%s685_s4] sm:$0xff] %v518_v0   ;;  %v339_v4 = vmul.f32 %v534_v48, %v314_v1 }
  0xbb   :  { %v347_v8 = vadd.f32 %v535_v51, %v339_v4 }
  0xbd   :  { %v351_v11 = vmax.f32 %v347_v8, 0.0 }
  0xbe   :  { %v315_v6 = vpop.f32.mrf.mxu2 }
  0xbf   :  { %v316_v7 = vadd.f32 %v315_v6, %v297_v5 }
  0xc1   :  { %v340_v9 = vmul.f32 %v534_v48, %v316_v7 }
  0xc3   :  { %v348_v10 = vadd.f32 %v535_v51, %v340_v9 }
  0xc5   :  { %v352_v12 = vmax.f32 %v348_v10, 0.0 }
  0xc7   :  { %v523_v13 = vpack.c.bf16 %v352_v12, %v351_v11 }
  0xc9   :  { %525 = vst [vmem:[%s685_s4 + $0x8] sm:$0xff] %v523_v13  }

// kernel: torchvision_model_forward.11
= control target key start
LH: loop header
LB: loop body
LE: loop exit
PB: predicated region body
PF: predicated region fallthrough
CT: control target
= control target key end

     0   :  { %s1043_s1 = inlined_call_operand.vmem [shape: bf16[640,128], index: 1, kind: input, shape index: {}]   ;;  %s1044_s0 = inlined_call_operand.vmem [shape: bf16[32,640], index: 0, kind: input, shape index: {}]   ;;  %s1045_s2 = inlined_call_operand.vmem [shape: f32[1,128], index: 2, kind: input, shape index: {}]   ;;  %s1046_s3 = inlined_call_operand.vmem [shape: f32[1,128], index: 3, kind: input, shape index: {}]   ;;  %s1047_s4 = inlined_call_operand.vmem [shape: bf16[32,128], index: 4, kind: output, shape index: {}]  }
   0x1   :  { %v772_v0 = vld [vmem:[%s1043_s1 + $0x38] sm:$0xff]  ;;  %v771_v4 = vld [vmem:[%s1043_s1 + $0x30] sm:$0xff]  ;;  %v770_v8 = vld [vmem:[%s1043_s1 + $0x28] sm:$0xff] }
   0x2   :  { %v780_v1 = vld [vmem:[%s1043_s1 + $0x78] sm:$0xff]  ;;  %413 = vmatpush.bf16.msra.mxu0 %v772_v0  ;;  %v779_v5 = vld [vmem:[%s1043_s1 + $0x70] sm:$0xff]  ;;  %v778_v9 = vld [vmem:[%s1043_s1 + $0x68] sm:$0xff] }
   0x3   :  { %v788_v2 = vld [vmem:[%s1043_s1 + $0xb8] sm:$0xff]  ;;  %432 = vmatpush.bf16.msra.mxu1 %v780_v1  ;;  %v787_v6 = vld [vmem:[%s1043_s1 + $0xb0] sm:$0xff]  ;;  %v786_v10 = vld [vmem:[%s1043_s1 + $0xa8] sm:$0xff] }
   0x4   :  { %v796_v3 = vld [vmem:[%s1043_s1 + $0xf8] sm:$0xff]  ;;  %451 = vmatpush.bf16.msra.mxu2 %v788_v2  ;;  %v795_v7 = vld [vmem:[%s1043_s1 + $0xf0] sm:$0xff]  ;;  %v794_v11 = vld [vmem:[%s1043_s1 + $0xe8] sm:$0xff] }
   0x5   :  { %470 = vmatpush.bf16.msra.mxu3 %v796_v3  ;;  %v769_v12 = vld [vmem:[%s1043_s1 + $0x20] sm:$0xff]  ;;  %v768_v16 = vld [vmem:[%s1043_s1 + $0x18] sm:$0xff]  ;;  %v767_v20 = vld [vmem:[%s1043_s1 + $0x10] sm:$0xff] }
   0x6   :  { %414 = vmatpush.bf16.msra.mxu0 %v771_v4  ;;  %v777_v13 = vld [vmem:[%s1043_s1 + $0x60] sm:$0xff]  ;;  %v776_v17 = vld [vmem:[%s1043_s1 + $0x58] sm:$0xff]  ;;  %v775_v21 = vld [vmem:[%s1043_s1 + $0x50] sm:$0xff] }
   0x7   :  { %433 = vmatpush.bf16.msra.mxu1 %v779_v5  ;;  %v785_v14 = vld [vmem:[%s1043_s1 + $0xa0] sm:$0xff]  ;;  %v784_v18 = vld [vmem:[%s1043_s1 + $0x98] sm:$0xff]  ;;  %v783_v22 = vld [vmem:[%s1043_s1 + $0x90] sm:$0xff] }
   0x8   :  { %452 = vmatpush.bf16.msra.mxu2 %v787_v6  ;;  %v793_v15 = vld [vmem:[%s1043_s1 + $0xe0] sm:$0xff]  ;;  %v792_v19 = vld [vmem:[%s1043_s1 + $0xd8] sm:$0xff]  ;;  %v791_v23 = vld [vmem:[%s1043_s1 + $0xd0] sm:$0xff] }
   0x9   :  { %471 = vmatpush.bf16.msra.mxu3 %v795_v7  ;;  %v766_v24 = vld [vmem:[%s1043_s1 + $0x8] sm:$0xff]  ;;  %v765_v28 = vld [vmem:[%s1043_s1] sm:$0xff]  ;;  %v757_v33 = vld [vmem:[%s1044_s0 + $0x10] sm:$0xf0] }
   0xa   :  { %415 = vmatpush.bf16.msra.mxu0 %v770_v8  ;;  %v774_v25 = vld [vmem:[%s1043_s1 + $0x48] sm:$0xff]  ;;  %v773_v29 = vld [vmem:[%s1043_s1 + $0x40] sm:$0xff]  ;;  %v559_v35 = vld [vmem:[%s1044_s0 + $0x14] sm:$0xf0] }
   0xb   :  { %434 = vmatpush.bf16.msra.mxu1 %v778_v9  ;;  %v782_v26 = vld [vmem:[%s1043_s1 + $0x88] sm:$0xff]  ;;  %v781_v30 = vld [vmem:[%s1043_s1 + $0x80] sm:$0xff]  ;;  %v758_v37 = vld [vmem:[%s1044_s0 + $0x18] sm:$0xf0] }
   0xc   :  { %453 = vmatpush.bf16.msra.mxu2 %v786_v10  ;;  %v790_v27 = vld [vmem:[%s1043_s1 + $0xc8] sm:$0xff]  ;;  %v789_v31 = vld [vmem:[%s1043_s1 + $0xc0] sm:$0xff]  ;;  %v804_v40 = vld [vmem:[%s1043_s1 + $0x138] sm:$0xff] }
   0xd   :  { %472 = vmatpush.bf16.msra.mxu3 %v794_v11  ;;  %v557_v32 = vld [vmem:[%s1044_s0] sm:$0xf]  ;;  %v755_v34 = vld [vmem:[%s1044_s0 + $0x4] sm:$0xf]  ;;  %v565_v36 = vld [vmem:[%s1044_s0 + $0x8] sm:$0xf] }
   0xe   :  { %416 = vmatpush.bf16.msra.mxu0 %v769_v12  ;;  %v756_v38 = vld [vmem:[%s1044_s0 + $0xc] sm:$0xf]  ;;  %v567_v39 = vld [vmem:[%s1044_s0 + $0x1c] sm:$0xf0]  ;;  %v558_v41 = vor.u32 %v757_v33, %v557_v32  ;;  %v562_v42 = vor.u32 %v755_v34, %v559_v35  ;;  %v566_v43 = vor.u32 %v758_v37, %v565_v36  ;;  %v803_v45 = vld [vmem:[%s1043_s1 + $0x130] sm:$0xff] }
   0xf   :  { %435 = vmatpush.bf16.msra.mxu1 %v777_v13  ;;  %v570_v44 = vor.u32 %v756_v38, %v567_v39  ;;  %v802_v46 = vld [vmem:[%s1043_s1 + $0x128] sm:$0xff]  ;;  %v801_v47 = vld [vmem:[%s1043_s1 + $0x120] sm:$0xff]  ;;  %v762_v49 = vld [vmem:[%s1044_s0 + $0x38] sm:$0xf0] }
  0x10   :  { %454 = vmatpush.bf16.msra.mxu2 %v785_v14  ;;  %v577_v48 = vld [vmem:[%s1044_s0 + $0x28] sm:$0xf]  ;;  %v760_v50 = vld [vmem:[%s1044_s0 + $0x2c] sm:$0xf]  ;;  %v579_v51 = vld [vmem:[%s1044_s0 + $0x3c] sm:$0xf0] }
  0x11   :  { %473 = vmatpush.bf16.msra.mxu3 %v793_v15  ;;  %v585_v52 = vld [vmem:[%s1044_s0 + $0x30] sm:$0xf]  ;;  %v763_v53 = vld [vmem:[%s1044_s0 + $0x40] sm:$0xf0]  ;;  %v761_v54 = vld [vmem:[%s1044_s0 + $0x34] sm:$0xf]  ;;  %v578_v57 = vor.u32 %v762_v49, %v577_v48  ;;  %v582_v58 = vor.u32 %v760_v50, %v579_v51 }
  0x12   :  { %417 = vmatpush.bf16.msra.mxu0 %v768_v16  ;;  %v587_v55 = vld [vmem:[%s1044_s0 + $0x44] sm:$0xf0]  ;;  %v800_v56 = vld [vmem:[%s1043_s1 + $0x118] sm:$0xff]  ;;  %v586_v59 = vor.u32 %v763_v53, %v585_v52  ;;  %v799_v61 = vld [vmem:[%s1043_s1 + $0x110] sm:$0xff] }
  0x13   :  { %436 = vmatpush.bf16.msra.mxu1 %v776_v17  ;;  %v590_v60 = vor.u32 %v761_v54, %v587_v55  ;;  %v798_v62 = vld [vmem:[%s1043_s1 + $0x108] sm:$0xff]  ;;  %v797_v63 = vld [vmem:[%s1043_s1 + $0x100] sm:$0xff]  ;;  %v573_v0 = vld [vmem:[%s1044_s0 + $0x10] sm:$0xf] }
  0x14   :  { %455 = vmatpush.bf16.msra.mxu2 %v784_v18  ;;  %v759_v1 = vld [vmem:[%s1044_s0 + $0x20] sm:$0xf0]  ;;  %v593_v2 = vld [vmem:[%s1044_s0 + $0x38] sm:$0xf]  ;;  %v764_v3 = vld [vmem:[%s1044_s0 + $0x48] sm:$0xf0] }
  0x15   :  { %474 = vmatpush.bf16.msra.mxu3 %v792_v19  ;;  %v574_v4 = vor.u32 %v759_v1, %v573_v0  ;;  %v594_v5 = vor.u32 %v764_v3, %v593_v2  ;;  %v824_v34 = vld [vmem:[%s1045_s2] ss:$0 sm:$0xff] }
  0x16   :  { %418 = vmatpush.bf16.msra.mxu0 %v767_v20 }
  0x17   :  { %437 = vmatpush.bf16.msra.mxu1 %v775_v21 }
  0x18   :  { %456 = vmatpush.bf16.msra.mxu2 %v783_v22 }
  0x19   :  { %475 = vmatpush.bf16.msra.mxu3 %v791_v23 }
  0x1a   :  { %419 = vmatpush.bf16.msra.mxu0 %v766_v24 }
  0x1b   :  { %438 = vmatpush.bf16.msra.mxu1 %v774_v25 }
  0x1c   :  { %457 = vmatpush.bf16.msra.mxu2 %v782_v26 }
  0x1d   :  { %476 = vmatpush.bf16.msra.mxu3 %v790_v27 }
  0x1e   :  { %420 = vmatpush.bf16.msra.mxu0 %v765_v28 }
  0x1f   :  { %439 = vmatpush.bf16.msra.mxu1 %v773_v29 }
  0x20   :  { %458 = vmatpush.bf16.msra.mxu2 %v781_v30 }
  0x21   :  { %477 = vmatpush.bf16.msra.mxu3 %v789_v31  ;;  %421 = vmatmul.bf16.vlgmr.msra.gmra.mxu0 %v558_v41 }
  0x22   :  { %489 = vmatpush.bf16.msrb.mxu0 %v804_v40  ;;  %440 = vmatmul.bf16.vlgmr.msra.gmra.mxu1 %v562_v42 }
  0x23   :  { %816 = vmatpush.bf16.msrb.mxu1 %v804_v40  ;;  %459 = vmatmul.bf16.vlgmr.msra.gmra.mxu2 %v566_v43  ;;  %v825_v40 = vld [vmem:[%s1046_s3] ss:$0 sm:$0xff] }
  0x24   :  { %478 = vmatmul.bf16.vlgmr.msra.gmra.mxu3 %v570_v44 }
  0x26   :  { %490 = vmatpush.bf16.msrb.mxu0 %v803_v45 }
  0x27   :  { %817 = vmatpush.bf16.msrb.mxu1 %v803_v45 }
  0x2a   :  { %491 = vmatpush.bf16.msrb.mxu0 %v802_v46 }
  0x2b   :  { %818 = vmatpush.bf16.msrb.mxu1 %v802_v46 }
  0x2e   :  { %492 = vmatpush.bf16.msrb.mxu0 %v801_v47 }
  0x2f   :  { %819 = vmatpush.bf16.msrb.mxu1 %v801_v47 }
  0x31   :  { %426 = vmatmul.bf16.gmra.mxu0 %v578_v57 }
  0x32   :  { %493 = vmatpush.bf16.msrb.mxu0 %v800_v56  ;;  %445 = vmatmul.bf16.gmra.mxu1 %v582_v58 }
  0x33   :  { %820 = vmatpush.bf16.msrb.mxu1 %v800_v56  ;;  %464 = vmatmul.bf16.gmra.mxu2 %v586_v59 }
  0x34   :  { %483 = vmatmul.bf16.gmra.mxu3 %v590_v60 }
  0x36   :  { %494 = vmatpush.bf16.msrb.mxu0 %v799_v61 }
  0x37   :  { %821 = vmatpush.bf16.msrb.mxu1 %v799_v61 }
  0x3a   :  { %495 = vmatpush.bf16.msrb.mxu0 %v798_v62 }
  0x3b   :  { %822 = vmatpush.bf16.msrb.mxu1 %v798_v62 }
  0x3e   :  { %496 = vmatpush.bf16.msrb.mxu0 %v797_v63 }
  0x3f   :  { %823 = vmatpush.bf16.msrb.mxu1 %v797_v63 }
  0x41   :  { %497 = vmatmul.bf16.vlgmr.msrb.gmra.mxu0 %v574_v4 }
  0x42   :  { %502 = vmatmul.bf16.vlgmr.msrb.gmra.mxu1 %v594_v5 }
  0x9e   :  { %v422_v6 = vpop.f32.mrf.mxu0 }
  0x9f   :  { %v441_v7 = vpop.f32.mrf.mxu1 }
  0xa0   :  { %v442_v19 = vadd.f32 %v441_v7, %v422_v6 }
  0xa6   :  { %v460_v8 = vpop.f32.mrf.mxu2  ;;  %v424_v10 = vpop.f32.mrf.mxu0 }
  0xa7   :  { %v479_v9 = vpop.f32.mrf.mxu3  ;;  %v443_v11 = vpop.f32.mrf.mxu1  ;;  %v461_v22 = vadd.f32 %v460_v8, %v442_v19 }
  0xa8   :  { %v444_v28 = vadd.f32 %v443_v11, %v424_v10 }
  0xa9   :  { %v480_v27 = vadd.f32 %v479_v9, %v461_v22 }
  0xae   :  { %v462_v12 = vpop.f32.mrf.mxu2  ;;  %v427_v13 = vpop.f32.mrf.mxu0 }
  0xaf   :  { %v446_v14 = vpop.f32.mrf.mxu1  ;;  %v481_v15 = vpop.f32.mrf.mxu3  ;;  %v463_v31 = vadd.f32 %v462_v12, %v444_v28 }
  0xb0   :  { %v447_v20 = vadd.f32 %v446_v14, %v427_v13 }
  0xb1   :  { %v482_v37 = vadd.f32 %v481_v15, %v463_v31 }
  0xb6   :  { %v465_v16 = vpop.f32.mrf.mxu2  ;;  %v429_v17 = vpop.f32.mrf.mxu0 }
  0xb7   :  { %v448_v18 = vpop.f32.mrf.mxu1  ;;  %v484_v21 = vpop.f32.mrf.mxu3  ;;  %v466_v23 = vadd.f32 %v465_v16, %v447_v20 }
  0xb8   :  { %v449_v30 = vadd.f32 %v448_v18, %v429_v17 }
  0xb9   :  { %v485_v29 = vadd.f32 %v484_v21, %v466_v23 }
  0xbe   :  { %v467_v24 = vpop.f32.mrf.mxu2  ;;  %v498_v25 = vpop.f32.mrf.mxu0 }
  0xbf   :  { %v503_v26 = vpop.f32.mrf.mxu1  ;;  %v468_v32 = vadd.f32 %v467_v24, %v449_v30  ;;  %v499_v33 = vadd.f32 %v498_v25, %v480_v27  ;;  %v486_v36 = vpop.f32.mrf.mxu3 }
  0xc0   :  { %v504_v35 = vadd.f32 %v503_v26, %v485_v29 }
  0xc1   :  { %v487_v38 = vadd.f32 %v486_v36, %v468_v32  ;;  %v527_v39 = vmul.f32 %v824_v34, %v499_v33 }
  0xc2   :  { %v529_v41 = vmul.f32 %v824_v34, %v504_v35 }
  0xc3   :  { %v535_v46 = vadd.f32 %v825_v40, %v527_v39 }
  0xc4   :  { %v537_v47 = vadd.f32 %v825_v40, %v529_v41 }
  0xc5   :  { %v539_v52 = vmax.f32 %v535_v46, 0.0 }
  0xc6   :  { %v500_v42 = vpop.f32.mrf.mxu0  ;;  %v541_v53 = vmax.f32 %v537_v47, 0.0 }
  0xc7   :  { %v505_v43 = vpop.f32.mrf.mxu1  ;;  %v501_v44 = vadd.f32 %v500_v42, %v482_v37 }
  0xc8   :  { %v506_v45 = vadd.f32 %v505_v43, %v487_v38 }
  0xc9   :  { %v528_v48 = vmul.f32 %v824_v34, %v501_v44 }
  0xca   :  { %v530_v49 = vmul.f32 %v824_v34, %v506_v45 }
  0xcb   :  { %v536_v50 = vadd.f32 %v825_v40, %v528_v48 }
  0xcc   :  { %v538_v51 = vadd.f32 %v825_v40, %v530_v49 }
  0xcd   :  { %v540_v54 = vmax.f32 %v536_v50, 0.0 }
  0xce   :  { %v542_v55 = vmax.f32 %v538_v51, 0.0 }
  0xcf   :  { %v808_v56 = vpack.c.bf16 %v540_v54, %v539_v52 }
  0xd0   :  { %v813_v57 = vpack.c.bf16 %v542_v55, %v541_v53 }
  0xd1   :  { %809 = vst [vmem:[%s1047_s4] sm:$0xff] %v808_v56  }
  0xd2   :  { %815 = vst [vmem:[%s1047_s4 + $0x8] sm:$0xff] %v813_v57  }

// kernel: torchvision_model_forward.12
= control target key start
LH: loop header
LB: loop body
LE: loop exit
PB: predicated region body
PF: predicated region fallthrough
CT: control target
= control target key end

     0   :  { %s425_s1 = inlined_call_operand.vmem [shape: bf16[128,128], index: 1, kind: input, shape index: {}]   ;;  %s426_s2 = inlined_call_operand.vmem [shape: f32[1,128], index: 2, kind: input, shape index: {}]   ;;  %s427_s3 = inlined_call_operand.vmem [shape: f32[1,128], index: 3, kind: input, shape index: {}]   ;;  %s428_s0 = inlined_call_operand.vmem [shape: bf16[72,128], index: 0, kind: input, shape index: {}]   ;;  %s429_s4 = inlined_call_operand.vmem [shape: f32[72,128], index: 4, kind: output, shape index: {}]  }
   0x1   :  { %v301_v0 = vld [vmem:[%s425_s1 + $0x38] sm:$0xff]  ;;  %v300_v1 = vld [vmem:[%s425_s1 + $0x30] sm:$0xff]  ;;  %v299_v2 = vld [vmem:[%s425_s1 + $0x28] sm:$0xff] }
   0x2   :  { %304 = vmatpush.bf16.msra.mxu3 %v301_v0  ;;  %303 = vmatpush.bf16.msra.mxu2 %v301_v0  ;;  %v298_v3 = vld [vmem:[%s425_s1 + $0x20] sm:$0xff]  ;;  %v297_v4 = vld [vmem:[%s425_s1 + $0x18] sm:$0xff]  ;;  %v296_v5 = vld [vmem:[%s425_s1 + $0x10] sm:$0xff] }
   0x3   :  { %140 = vmatpush.bf16.msra.mxu0 %v301_v0  ;;  %302 = vmatpush.bf16.msra.mxu1 %v301_v0  ;;  %v295_v6 = vld [vmem:[%s425_s1 + $0x8] sm:$0xff]  ;;  %v294_v7 = vld [vmem:[%s425_s1] sm:$0xff]  ;;  %v293_v8 = vld [vmem:[%s428_s0 + $0x18] sm:$0xff] }
   0x4   :  { %v292_v9 = vld [vmem:[%s428_s0 + $0x10] sm:$0xff]  ;;  %v290_v10 = vld [vmem:[%s428_s0] sm:$0xff]  ;;  %v291_v11 = vld [vmem:[%s428_s0 + $0x8] sm:$0xff] }
   0x5   :  { %v47_v12 = vld [vmem:[%s428_s0 + $0x20] sm:$0xf] }
   0x6   :  { %307 = vmatpush.bf16.msra.mxu3 %v300_v1  ;;  %306 = vmatpush.bf16.msra.mxu2 %v300_v1  ;;  %v81_v13 = vunpack.c.l.b16 %v47_v12  ;;  %v326_v15 = vld [vmem:[%s426_s2] ss:$0 sm:$0xff] }
   0x7   :  { %141 = vmatpush.bf16.msra.mxu0 %v300_v1  ;;  %305 = vmatpush.bf16.msra.mxu1 %v300_v1  ;;  %v327_v18 = vld [vmem:[%s427_s3] ss:$0 sm:$0xff] }
   0x8   :  { %v86_v14 = vpack.c.b16 %v81_v13, %v81_v13 }
   0xa   :  { %310 = vmatpush.bf16.msra.mxu3 %v299_v2  ;;  %309 = vmatpush.bf16.msra.mxu2 %v299_v2 }
   0xb   :  { %142 = vmatpush.bf16.msra.mxu0 %v299_v2  ;;  %308 = vmatpush.bf16.msra.mxu1 %v299_v2 }
   0xe   :  { %313 = vmatpush.bf16.msra.mxu3 %v298_v3  ;;  %312 = vmatpush.bf16.msra.mxu2 %v298_v3 }
   0xf   :  { %143 = vmatpush.bf16.msra.mxu0 %v298_v3  ;;  %311 = vmatpush.bf16.msra.mxu1 %v298_v3 }
  0x12   :  { %316 = vmatpush.bf16.msra.mxu3 %v297_v4  ;;  %315 = vmatpush.bf16.msra.mxu2 %v297_v4 }
  0x13   :  { %144 = vmatpush.bf16.msra.mxu0 %v297_v4  ;;  %314 = vmatpush.bf16.msra.mxu1 %v297_v4 }
  0x16   :  { %319 = vmatpush.bf16.msra.mxu3 %v296_v5  ;;  %318 = vmatpush.bf16.msra.mxu2 %v296_v5 }
  0x17   :  { %145 = vmatpush.bf16.msra.mxu0 %v296_v5  ;;  %317 = vmatpush.bf16.msra.mxu1 %v296_v5 }
  0x1a   :  { %322 = vmatpush.bf16.msra.mxu3 %v295_v6  ;;  %321 = vmatpush.bf16.msra.mxu2 %v295_v6 }
  0x1b   :  { %146 = vmatpush.bf16.msra.mxu0 %v295_v6  ;;  %320 = vmatpush.bf16.msra.mxu1 %v295_v6 }
  0x1e   :  { %325 = vmatpush.bf16.msra.mxu3 %v294_v7  ;;  %324 = vmatpush.bf16.msra.mxu2 %v294_v7 }
  0x1f   :  { %147 = vmatpush.bf16.msra.mxu0 %v294_v7  ;;  %323 = vmatpush.bf16.msra.mxu1 %v294_v7 }
  0x21   :  { %163 = vmatmul.bf16.vlgmr.msra.gmra.mxu3 %v293_v8  ;;  %158 = vmatmul.bf16.vlgmr.msra.gmra.mxu2 %v292_v9 }
  0x22   :  { %148 = vmatmul.bf16.vlgmr.msra.gmra.mxu0 %v290_v10  ;;  %153 = vmatmul.bf16.vlgmr.msra.gmra.mxu1 %v291_v11 }
  0x31   :  { %168 = vmatmul.bf16.gmra.mxu3 %v86_v14 }
  0x9f   :  { %v149_v16 = vpop.f32.mrf.mxu0  ;;  %v154_v17 = vpop.f32.mrf.mxu1 }
  0xa0   :  { %v207_v19 = vmul.f32 %v326_v15, %v149_v16  ;;  %v209_v20 = vmul.f32 %v326_v15, %v154_v17 }
  0xa2   :  { %v220_v21 = vadd.f32 %v327_v18, %v207_v19  ;;  %v222_v22 = vadd.f32 %v327_v18, %v209_v20 }
  0xa4   :  { %v164_v23 = vpop.f32.mrf.mxu3  ;;  %229 = vst [vmem:[%s429_s4] sm:$0xff] %v220_v21  ;;  %v159_v24 = vpop.f32.mrf.mxu2 }
  0xa5   :  { %v213_v25 = vmul.f32 %v326_v15, %v164_v23  ;;  %231 = vst [vmem:[%s429_s4 + $0x10] sm:$0xff] %v222_v22  ;;  %v211_v26 = vmul.f32 %v326_v15, %v159_v24 }
  0xa7   :  { %v226_v27 = vadd.f32 %v327_v18, %v213_v25  ;;  %v224_v28 = vadd.f32 %v327_v18, %v211_v26  ;;  %v151_v29 = vpop.f32.mrf.mxu0  ;;  %v156_v30 = vpop.f32.mrf.mxu1 }
  0xa8   :  { %v208_v31 = vmul.f32 %v326_v15, %v151_v29  ;;  %v210_v32 = vmul.f32 %v326_v15, %v156_v30 }
  0xa9   :  { %235 = vst [vmem:[%s429_s4 + $0x30] sm:$0xff] %v226_v27 }
  0xaa   :  { %233 = vst [vmem:[%s429_s4 + $0x20] sm:$0xff] %v224_v28  ;;  %v221_v33 = vadd.f32 %v327_v18, %v208_v31  ;;  %v223_v34 = vadd.f32 %v327_v18, %v210_v32 }
  0xac   :  { %v166_v35 = vpop.f32.mrf.mxu3  ;;  %230 = vst [vmem:[%s429_s4 + $0x8] sm:$0xff] %v221_v33  ;;  %v161_v36 = vpop.f32.mrf.mxu2 }
  0xad   :  { %v214_v37 = vmul.f32 %v326_v15, %v166_v35  ;;  %232 = vst [vmem:[%s429_s4 + $0x18] sm:$0xff] %v223_v34  ;;  %v212_v38 = vmul.f32 %v326_v15, %v161_v36 }
  0xaf   :  { %v227_v39 = vadd.f32 %v327_v18, %v214_v37  ;;  %v225_v40 = vadd.f32 %v327_v18, %v212_v38 }
  0xb1   :  { %236 = vst [vmem:[%s429_s4 + $0x38] sm:$0xff] %v227_v39 }
  0xb2   :  { %234 = vst [vmem:[%s429_s4 + $0x28] sm:$0xff] %v225_v40 }
  0xb4   :  { %v169_v41 = vpop.f32.mrf.mxu3 }
  0xb5   :  { %v215_v42 = vmul.f32 %v326_v15, %v169_v41 }
  0xb7   :  { %v228_v43 = vadd.f32 %v327_v18, %v215_v42 }
  0xb9   :  { %237 = vst [vmem:[%s429_s4 + $0x40] sm:$0xff] %v228_v43 }
  0xbc   :  { %v171_v44 = vpop.f32.mrf.mxu3 }

// kernel: torchvision_model_forward.13
= control target key start
LH: loop header
LB: loop body
LE: loop exit
PB: predicated region body
PF: predicated region fallthrough
CT: control target
= control target key end

     0   :  { %8 = vsyncpa [#allocation3], 0  ;;  %s558_s0 = inlined_call_operand.vmem [shape: f32[6,6,6], index: 0, kind: input, shape index: {}]   ;;  %s559_s1 = inlined_call_operand.vmem [shape: f32[16,6], index: 1, kind: input, shape index: {}]   ;;  %s560_s2 = inlined_call_operand.vmem [shape: f32[6,16], index: 2, kind: input, shape index: {}]   ;;  %s561_s3 = inlined_call_operand.hbm [shape: f32[6,16,16], index: 3, kind: output, shape index: {}]  }
   0x1   :  { %10 = vsyncpa [#allocation3 + $0x1], 0  ;;  %s464_s12 = smov 0   ;;  %s466_s13 = smov 0  }
   0x2   :  { %s468_s14 = smov 0   ;;  %s470_s15 = smov 0  }
   0x3 LB: > { %s485_s16 = sadd.s32 4294967295, %s440_s15   ;;  %s317_s17 = sadd.s32 4294967294, %s440_s15   ;;  %s440_s15 = sphi %s470_s15, %s567_s15   ;;  %s436_s14 = sphi %s468_s14, %s566_s14   ;;  %s432_s13 = sphi %s466_s13, %s565_s13   ;;  %s428_s12 = sphi %s464_s12, %s564_s12  }
   0x4   : > { %s489_s18 = sadd.s32 1, %s440_s15   ;;  %s91_s19 = sadd.s32 1, %s436_s14 }
   0x5   : > { %s88_s20 = ssub.s32 %s440_s15, %s489_s18  ;;  %p101_p0 = scmp.ne.s32.totalorder %s436_s14, %s432_s13 }
   0x6   : > { %p89_p1 = scmp.eq.s32.totalorder %s88_s20, 0  ;;  %p102_p2 = scmp.eq.s32.totalorder %s485_s16, 5 }
   0x7   : > { %p107_p3 = scmp.ne.s32.totalorder %s432_s13, %s428_s12  ;;  %p108_p4 = scmp.eq.s32.totalorder %s317_s17, 5 }
   0x8   : > { %s500_s21 = scalar_select %p89_p1, %s436_s14, %s91_s19  }
   0x9   : > { %p502_p5 = por %p102_p2, %p101_p0  ;;  %p506_p6 = por %p108_p4, %p107_p3 }
   0xa   : > { %p320_p7 = scmp.ge.s32.totalorder %s440_s15, 1  ;;  %p139_p8 = scmp.lt.s32.totalorder %s440_s15, 7 }
   0xc   : > { %p140_p9 = pnand %p320_p7, %p139_p8 }
   0xd   : > { %p162_p10 = scmp.lt.s32.totalorder (!%p140_p9), %s485_s16, 5  ;;  %s159_s8 = sand.u32 (!%p140_p9), 1, %s432_s13  }
   0xe   : > { %143 = sbr.rel (%p140_p9) target bundleno = 293 (0x125), region = 32  ;;  %s321_s9 = sshll.u32 (!%p140_p9), %s159_s8, 4 }
   0xf   : > { %s161_s10 = scalar_lea.vmem (!%p140_p9), [#allocation2], %s321_s9  ;;  %s334_s11 = sshll.u32 (!%p140_p9), %s485_s16, 4 }
  0x10   : > { %s251_s20 = scalar_lea.hbm (!%p140_p9), %s561_s3, %s334_s11  ;;  %s240_s26 = scalar_lea.sflag (!%p140_p9), [#allocation3], %s159_s8 }
  0x11   : > { %s398_s30 = scalar_lea.hbm (!%p140_p9), %s561_s3, 96 }
  0x13   : > { %s163_s24 = scalar_select %p162_p10, %s485_s16, 5  ;;  %vm176_vm0 = vcmask 1045504   ;;  %v167_v0 = vld [vmem:[%s559_s1 + $0x8] sm:$0xff]  ;;  %vm169_vm1 = vcmask 48128   ;;  %v166_v1 = vld [vmem:[%s559_s1] sm:$0xff]  ;;  %vm236_vm2 = vcmask 130048  }
  0x14   : > { %v203_v3 = vld [vmem:[%s560_s2] sm:$0x3f] }
  0x15   : > { %s322_s25 = sshll.u32 %s163_s24, 3  ;;  %336 = vmatpush.msk.msra.mxu3 %vm176_vm0, %v203_v3  ;;  %326 = vmatpush.msk.msra.mxu1 %vm176_vm0, %v203_v3  ;;  %s252_s24 = sshll.u32 %s161_s10, 4  ;;  %s253_s24 = int_to_ptr.vmem [resolvable:$true] %s252_s24 }
  0x16   : > { %s165_s28 = scalar_lea.vmem %s558_s0, %s322_s25  ;;  %s254_s25 = sshll.u32 %s251_s20, 4  ;;  %s255_s25 = int_to_ptr.hbm [resolvable:$true] %s254_s25 }
  0x17   : > { %v168_v2 = vld [vmem:[%s165_s28] sm:$0x3f]  ;;  %s392_s27 = sshra.s32 %s255_s25, 4  ;;  %s393_s27 = int_to_ptr.hbm [resolvable:$true] %s392_s27 }
  0x18   : > { %335 = vmatpush.msk.msra.mxu2 %vm176_vm0, %v168_v2  ;;  %323 = vmatpush.msk.msra.mxu0 %vm176_vm0, %v168_v2  ;;  %s394_s28 = scalar_lea.hbm %s393_s27, 16  ;;  %p399_p0 = scmp.lt.s32.totalorder %s393_s27, %s561_s3 }
  0x19   : > { %325 = vmatmul.msk.f32.vlgmr.msra.gmra.mxu2 %vm169_vm1, %v167_v0  ;;  %324 = vmatmul.msk.f32.vlgmr.msra.gmra.mxu0 %vm169_vm1, %v166_v1  ;;  %p395_p11 = scmp.ne.s32.totalorder %s393_s27, %s394_s28  ;;  %p400_p1 = scmp.lt.s32.totalorder %s398_s30, %s394_s28 }
  0x1b   : > { %p396_p12 = pnand %p395_p11, %p502_p5  ;;  %p401_p2 = por %p400_p1, %p399_p0 }
  0x1d   : > { %p397_p13 = pneg %p396_p12 }
  0x1f   : > { %p402_p3 = pnand %p401_p2, %p397_p13 }
  0x96   : > { %v197_v4 = vpop.f32.mrf.mxu0 }
  0x97   : > { %327 = vmatmul.msk.f32.vlgmr.msra.gmra.mxu1 %vm169_vm1, %v197_v4 }
  0x9c   : > { %v200_v5 = vpop.f32.mrf.mxu2 }
  0x9d   : > { %328 = vmatmul.msk.f32.vlgmr.msra.gmra.mxu3 %vm169_vm1, %v200_v5 }
 0x114   : > { %v230_v6 = vpop.f32.mrf.mxu1 }
 0x115   : > { %237 = vst.msk [vmem:[%s161_s10] sm:$0xff] %vm236_vm2, %v230_v6 }
 0x120   : > { %v233_v7 = vpop.f32.mrf.mxu3 }
 0x121   : > { %238 = vst.msk [vmem:[%s161_s10 + $0x8] sm:$0xff] %vm236_vm2, %v233_v7 }
 0x122   : > { %405 = shalt.err (!%p402_p3)
}
 0x123   : > { %s442_s6 = smov 128   ;;  %s443_s7 = smov 8  }
 0x124   : > { %337 = dma.vmem_to_hbm [thread:$0]  (%p502_p5), %s253_s24, 256, %s255_s25, %s240_s26, %s442_s6, %s442_s6, %s443_s7  }
 0x125 PF: > { %p343_p4 = scmp.ge.s32.totalorder %s440_s15, 2  ;;  %s269_s8 = sand.u32 1, %s428_s12  }
 0x126   : > { %s270_s9 = scalar_lea.sflag [#allocation3], %s269_s8 }
 0x127   : > { %p340_p7 = pnand %p343_p4, %p506_p6 }
 0x129   : > { %p341_p8 = pneg %p340_p7 }
 0x12b   : > { %423 = dma.done.wait (%p341_p8), %s270_s9, 256  }
 0x12c   : > { %425 = vsyncadd (%p341_p8), %s270_s9, 4294967040  ;;  %p13_p9 = scmp.ge.s32.totalorder %s489_s18, 8   ;;  %s564_s12 = smov %s432_s13 }
 0x12d   : > { %s565_s13 = smov %s436_s14  ;;  %s566_s14 = smov %s500_s21 }
 0x12e   : > { %s567_s15 = smov %s489_s18  ;;  %15 = sbr.rel (!%p13_p9) target bundleno = 3 (0x3), region = 67 }
 0x133   :  { %276 = vsyncpa [#allocation3], 1 }
 0x134   :  { %278 = vsyncpa [#allocation3 + $0x1], 1 }

</bundles_post_ra>
